<compile_context>
chip_gen: v6e
topology: v6e:2x2x1
jax: 0.10.0
libtpu: 0.0.40
codegen_flags: <defaults>
</compile_context>

<pallas_src>
import functools

import jax
import jax.numpy as jnp
from jax import lax
from jax.experimental import pallas as pl
from jax.experimental.pallas import tpu as pltpu


LANE = 128     # vreg lane width
SUBLANE = 8    # f32 sublanes per vreg


def _round_up(x, m):
    return (x + m - 1) // m * m


def _seq_chunk(seq_len, target):
    """Largest divisor of seq_len that is <= target (chunks tile seq exactly)."""
    t = min(seq_len, target)
    while seq_len % t:
        t -= 1
    return t


def net_kernel(x_ref, W_ref, U_ref, b_ref,
               fc1w_ref, fc1b_ref, fc2w_ref, fc2b_ref,
               out_ref,
               gx_ref, h_ref, c_ref, hsum_ref,
               *, hidden_pad, seq_len, unroll):
    """One (batch-block, seq-chunk) grid step of the fused LSTM classifier.

    x_ref:    (T_S, tB, E_p)   embedded tokens for this chunk (seq-major)
    W_ref:    (E_p, 4*H_p)     input->gates
    U_ref:    (H_p, 4*H_p)     hidden->gates
    b_ref:    (1, 4*H_p)       gate bias
    fc1*_ref: (H_p, H_p), (1, H_p)
    fc2*_ref: (H_p, C_p), (1, C_p)
    out_ref:  (tB, C_p)        logits (written on the last seq chunk)
    gx_ref:   (T_S*tB, 4*H_p)  precomputed x@W + b for the whole chunk
    h/c/hsum: (tB, H_p)        recurrent state carried across seq chunks
    """
    s_idx = pl.program_id(1)
    n_s = pl.num_programs(1)
    T_S, tB, E_p = x_ref.shape
    H = hidden_pad

    @pl.when(s_idx == 0)
    def _():
        h_ref[...] = jnp.zeros_like(h_ref)
        c_ref[...] = jnp.zeros_like(c_ref)
        hsum_ref[...] = jnp.zeros_like(hsum_ref)

    # Hoisted input projection: one big MXU matmul for the whole chunk.
    x_flat = x_ref[...].reshape(T_S * tB, E_p)
    gx_ref[...] = (jnp.dot(x_flat, W_ref[...],
                           preferred_element_type=jnp.float32)
                   + b_ref[...])

    U = U_ref[...]

    def step(t, carry):
        h, c, h_sum = carry
        row = pl.multiple_of(t * tB, tB)
        gates = (gx_ref[pl.ds(row, tB), :]
                 + jnp.dot(h.astype(U.dtype), U,
                           preferred_element_type=jnp.float32))
        # 128-lane-aligned gate slices (H == H_p == multiple of 128).
        f_t = jax.nn.sigmoid(gates[:, 0 * H:1 * H])
        i_t = jax.nn.sigmoid(gates[:, 1 * H:2 * H])
        g_t = jnp.tanh(gates[:, 2 * H:3 * H])
        o_t = jax.nn.sigmoid(gates[:, 3 * H:4 * H])
        c = f_t * c + i_t * g_t
        h = o_t * jnp.tanh(c)
        return h, c, h_sum + h

    carry0 = (h_ref[...], c_ref[...], hsum_ref[...])
    h, c, h_sum = lax.fori_loop(0, T_S, step, carry0, unroll=unroll)
    h_ref[...] = h
    c_ref[...] = c
    hsum_ref[...] = h_sum

    @pl.when(s_idx == n_s - 1)
    def _():
        feat = h_sum * jnp.float32(1.0 / seq_len)              # mean pool
        z1 = (jnp.dot(feat.astype(fc1w_ref.dtype), fc1w_ref[...],
                      preferred_element_type=jnp.float32)
              + fc1b_ref[...])
        z1 = jnp.maximum(z1, 0.0)                              # ReLU
        out_ref[...] = (jnp.dot(z1.astype(fc2w_ref.dtype), fc2w_ref[...],
                                preferred_element_type=jnp.float32)
                        + fc2b_ref[...]).astype(out_ref.dtype)


def net_forward(tokens, params, *, hidden_size, use_bf16=False):
    """tokens: int32 (batch, seq).  Returns logits (batch, num_classes)."""
    emb = params["embedding"]
    W, U, bias = params["W"], params["U"], params["bias"]
    fc1w, fc1b = params["fc1_w"], params["fc1_b"]
    fc2w, fc2b = params["fc2_w"], params["fc2_b"]

    B, S = tokens.shape
    E = emb.shape[1]
    H = hidden_size
    C = fc2w.shape[1]

    # Pad minor dims to the 128-lane vreg width; batch to 8 sublanes.
    E_p = _round_up(E, LANE)
    H_p = _round_up(H, LANE)
    C_p = _round_up(C, LANE)
    B_p = _round_up(B, SUBLANE)
    tB = min(B_p, 128)                 # batch block ('parallel' grid axis)
    B_p = _round_up(B_p, tB)
    T_S = _seq_chunk(S, 64)            # seq chunk streamed through VMEM
    nb, ns = B_p // tB, S // T_S

    f32 = jnp.float32
    mm_dtype = jnp.bfloat16 if use_bf16 else f32

    def pad_gates(M, rows, rows_p):
        # (rows, 4H) -> (rows_p, 4*H_p), keeping each gate on a 128-lane boundary.
        parts = jnp.split(M.astype(f32), 4, axis=1)
        parts = [jnp.pad(p, ((0, rows_p - rows), (0, H_p - H))) for p in parts]
        return jnp.concatenate(parts, axis=1)

    W_p = pad_gates(W, E, E_p).astype(mm_dtype)
    U_p = pad_gates(U, H, H_p).astype(mm_dtype)
    b_parts = jnp.split(bias.reshape(1, -1).astype(f32), 4, axis=1)
    bias_p = jnp.concatenate(
        [jnp.pad(p, ((0, 0), (0, H_p - H))) for p in b_parts], axis=1)

    fc1w_p = jnp.pad(fc1w.astype(f32),
                     ((0, H_p - H), (0, H_p - H))).astype(mm_dtype)
    fc1b_p = jnp.pad(fc1b.reshape(1, -1).astype(f32), ((0, 0), (0, H_p - H)))
    fc2w_p = jnp.pad(fc2w.astype(f32),
                     ((0, H_p - H), (0, C_p - C))).astype(mm_dtype)
    fc2b_p = jnp.pad(fc2b.reshape(1, -1).astype(f32), ((0, 0), (0, C_p - C)))

    # Embedding lookup in JAX glue.  The table is lane-padded once so the
    # gathered activations arrive padded, and tokens.T makes the gather emit
    # the seq-major layout directly (no extra HBM transpose of the big tensor).
    # TODO(synk): could move the gather in-kernel via scalar-prefetched ids +
    # pl.Element row gather to avoid materializing x in HBM at all.
    emb_p = jnp.pad(emb.astype(f32), ((0, 0), (0, E_p - E))).astype(mm_dtype)
    tok_p = jnp.pad(tokens, ((0, B_p - B), (0, 0)))
    x = jnp.take(emb_p, tok_p.T, axis=0)                 # (S, B_p, E_p)

    kernel = functools.partial(
        net_kernel, hidden_pad=H_p, seq_len=S,
        unroll=True if T_S <= 16 else 8)

    def wspec(shape):
        return pl.BlockSpec(shape, lambda b, s: (0, 0))

    grid_spec = pltpu.PrefetchScalarGridSpec(
        num_scalar_prefetch=0,
        grid=(nb, ns),
        in_specs=[
            pl.BlockSpec((T_S, tB, E_p), lambda b, s: (s, b, 0)),   # x chunk
            wspec((E_p, 4 * H_p)),                                  # W
            wspec((H_p, 4 * H_p)),                                  # U
            wspec((1, 4 * H_p)),                                    # bias
            wspec((H_p, H_p)),                                      # fc1_w
            wspec((1, H_p)),                                        # fc1_b
            wspec((H_p, C_p)),                                      # fc2_w
            wspec((1, C_p)),                                        # fc2_b
        ],
        out_specs=pl.BlockSpec((tB, C_p), lambda b, s: (b, 0)),
        scratch_shapes=[
            pltpu.VMEM((T_S * tB, 4 * H_p), jnp.float32),   # gates_x chunk
            pltpu.VMEM((tB, H_p), jnp.float32),             # h
            pltpu.VMEM((tB, H_p), jnp.float32),             # c
            pltpu.VMEM((tB, H_p), jnp.float32),             # sum of h_t
        ],
    )

    flops = (2.0 * S * B_p * 4 * H_p * (E_p + H_p)
             + 2.0 * B_p * H_p * (H_p + C_p))
    cost = pl.CostEstimate(
        flops=int(flops),
        transcendentals=int(5 * S * B_p * H_p),
        bytes_accessed=int(4 * (S * B_p * E_p + (E_p + H_p) * 4 * H_p
                                + H_p * (H_p + C_p) + B_p * C_p)),
    )

    out_p = pl.pallas_call(
        kernel,
        out_shape=jax.ShapeDtypeStruct((B_p, C_p), jnp.float32),
        grid_spec=grid_spec,
        compiler_params=pltpu.CompilerParams(
            dimension_semantics=("parallel", "arbitrary"),
            vmem_limit_bytes=32 * 1024 * 1024),
        cost_estimate=cost,
    )(x, W_p, U_p, bias_p, fc1w_p, fc1b_p, fc2w_p, fc2b_p)

    return out_p[:B, :C]


def init_params(key, vocab_size, embedding_size, hidden_size, num_classes):
    ks = jax.random.split(key, 8)
    bnd = 1.0 / jnp.sqrt(jnp.float32(hidden_size))

    def unif(k, shape):
        return jax.random.uniform(k, shape, jnp.float32, -bnd, bnd)

    return {
        # nn.Embedding default init is N(0, 1)
        "embedding": jax.random.normal(ks[0], (vocab_size, embedding_size),
                                       jnp.float32),
        "W": unif(ks[1], (embedding_size, 4 * hidden_size)),
        "U": unif(ks[2], (hidden_size, 4 * hidden_size)),
        "bias": unif(ks[3], (1, 4 * hidden_size)),
        # Linear weights stored as (in, out)
        "fc1_w": unif(ks[4], (hidden_size, hidden_size)),
        "fc1_b": unif(ks[5], (1, hidden_size)),
        "fc2_w": unif(ks[6], (hidden_size, num_classes)),
        "fc2_b": unif(ks[7], (1, num_classes)),
    }


def net_forward_ref(tokens, params):
    """Pure-JAX reference implementation (mirrors the PyTorch forward)."""
    x = jnp.take(params["embedding"], tokens, axis=0)          # (B, S, E)
    B, S, _ = x.shape
    H = params["U"].shape[0]
    h = jnp.zeros((B, H), jnp.float32)
    c = jnp.zeros((B, H), jnp.float32)
    h_sum = jnp.zeros((B, H), jnp.float32)
    for t in range(S):
        x_t = x[:, t, :]
        gates = x_t @ params["W"] + h @ params["U"] + params["bias"][0]
        f = jax.nn.sigmoid(gates[:, :H])
        i = jax.nn.sigmoid(gates[:, H:2 * H])
        g = jnp.tanh(gates[:, 2 * H:3 * H])
        o = jax.nn.sigmoid(gates[:, 3 * H:])
        c = f * c + i * g
        h = o * jnp.tanh(c)
        h_sum = h_sum + h
    feat = h_sum / S
    z1 = jnp.maximum(feat @ params["fc1_w"] + params["fc1_b"][0], 0.0)
    return z1 @ params["fc2_w"] + params["fc2_b"][0]


if __name__ == "__main__":
    VOCAB = 50
    EMBED = 32
    HIDDEN = 32
    NUM_CLASSES = 2
    BATCH = 8
    SEQ = 8

    key = jax.random.PRNGKey(0)
    k_params, k_tokens = jax.random.split(key)
    params = init_params(k_params, VOCAB, EMBED, HIDDEN, NUM_CLASSES)
    tokens = jax.random.randint(k_tokens, (BATCH, SEQ), 0, VOCAB, jnp.int32)

    logits = net_forward(tokens, params, hidden_size=HIDDEN)
    logits = jax.block_until_ready(logits)

    ref = net_forward_ref(tokens, params)
    assert logits.shape == (BATCH, NUM_CLASSES)
    assert jnp.allclose(logits, ref, atol=1e-4, rtol=1e-4), (
        f"max abs err {jnp.max(jnp.abs(logits - ref))}")

    print("KERNEL_OK")
</pallas_src>

<mosaic_0001>
module attributes {stable_mosaic.version = 11 : i64} {
  func.func @net_kernel(%arg0: i32, %arg1: i32, %arg2: memref<8x8x128xf32, #tpu.memory_space<vmem>>, %arg3: memref<128x512xf32, #tpu.memory_space<vmem>>, %arg4: memref<128x512xf32, #tpu.memory_space<vmem>>, %arg5: memref<1x512xf32, #tpu.memory_space<vmem>>, %arg6: memref<128x128xf32, #tpu.memory_space<vmem>>, %arg7: memref<1x128xf32, #tpu.memory_space<vmem>>, %arg8: memref<128x128xf32, #tpu.memory_space<vmem>>, %arg9: memref<1x128xf32, #tpu.memory_space<vmem>>, %arg10: memref<8x128xf32, #tpu.memory_space<vmem>>, %arg11: memref<64x512xf32, #tpu.memory_space<vmem>>, %arg12: memref<8x128xf32, #tpu.memory_space<vmem>>, %arg13: memref<8x128xf32, #tpu.memory_space<vmem>>, %arg14: memref<8x128xf32, #tpu.memory_space<vmem>>) attributes {dimension_semantics = [#tpu.dimension_semantics<parallel>, #tpu.dimension_semantics<arbitrary>], iteration_bounds = array<i64: 1, 1>, scalar_prefetch = 0 : i64, scratch_operands = 4 : i64, tpu.core_type = #tpu.core_type<tc>, window_params = [{transform_indices = @transform_0, window_bounds = array<i64: 8, 8, 128>}, {pipeline_mode = #tpu.pipeline_mode<synchronous>, transform_indices = @transform_1, window_bounds = array<i64: 128, 512>}, {pipeline_mode = #tpu.pipeline_mode<synchronous>, transform_indices = @transform_2, window_bounds = array<i64: 128, 512>}, {pipeline_mode = #tpu.pipeline_mode<synchronous>, transform_indices = @transform_3, window_bounds = array<i64: 1, 512>}, {pipeline_mode = #tpu.pipeline_mode<synchronous>, transform_indices = @transform_4, window_bounds = array<i64: 128, 128>}, {pipeline_mode = #tpu.pipeline_mode<synchronous>, transform_indices = @transform_5, window_bounds = array<i64: 1, 128>}, {pipeline_mode = #tpu.pipeline_mode<synchronous>, transform_indices = @transform_6, window_bounds = array<i64: 128, 128>}, {pipeline_mode = #tpu.pipeline_mode<synchronous>, transform_indices = @transform_7, window_bounds = array<i64: 1, 128>}, {transform_indices = @transform_8, window_bounds = array<i64: 8, 128>}]} {
    %c0_i32 = arith.constant 0 : i32
    %0 = arith.cmpi eq, %arg1, %c0_i32 : i32
    %1 = arith.extui %0 : i1 to i32
    %c0_i32_0 = arith.constant 0 : i32
    %2 = arith.cmpi ne, %1, %c0_i32_0 : i32
    scf.if %2 {
      %cst_74 = arith.constant 0.000000e+00 : f32
      %277 = vector.broadcast %cst_74 : f32 to vector<8x128xf32>
      %c0_75 = arith.constant 0 : index
      %c0_76 = arith.constant 0 : index
      %278 = vector.load %arg12[%c0_75, %c0_76] : memref<8x128xf32, #tpu.memory_space<vmem>>, vector<8x128xf32>
      tpu.vector_store %arg12[%c0_75, %c0_76], %277 {strides = array<i32>} : memref<8x128xf32, #tpu.memory_space<vmem>>, vector<8x128xf32>,
      %cst_77 = arith.constant 0.000000e+00 : f32
      %279 = vector.broadcast %cst_77 : f32 to vector<8x128xf32>
      %c0_78 = arith.constant 0 : index
      %c0_79 = arith.constant 0 : index
      %280 = vector.load %arg13[%c0_78, %c0_79] : memref<8x128xf32, #tpu.memory_space<vmem>>, vector<8x128xf32>
      tpu.vector_store %arg13[%c0_78, %c0_79], %279 {strides = array<i32>} : memref<8x128xf32, #tpu.memory_space<vmem>>, vector<8x128xf32>,
      %cst_80 = arith.constant 0.000000e+00 : f32
      %281 = vector.broadcast %cst_80 : f32 to vector<8x128xf32>
      %c0_81 = arith.constant 0 : index
      %c0_82 = arith.constant 0 : index
      %282 = vector.load %arg14[%c0_81, %c0_82] : memref<8x128xf32, #tpu.memory_space<vmem>>, vector<8x128xf32>
      tpu.vector_store %arg14[%c0_81, %c0_82], %281 {strides = array<i32>} : memref<8x128xf32, #tpu.memory_space<vmem>>, vector<8x128xf32>,
    } else {
    }
    %c0 = arith.constant 0 : index
    %c0_1 = arith.constant 0 : index
    %c0_2 = arith.constant 0 : index
    %3 = vector.load %arg2[%c0, %c0_1, %c0_2] : memref<8x8x128xf32, #tpu.memory_space<vmem>>, vector<8x8x128xf32>
    %4 = vector.shape_cast %3 : vector<8x8x128xf32> to vector<64x128xf32>
    %c0_3 = arith.constant 0 : index
    %c0_4 = arith.constant 0 : index
    %5 = vector.load %arg3[%c0_3, %c0_4] : memref<128x512xf32, #tpu.memory_space<vmem>>, vector<128x512xf32>
    %cst = arith.constant dense<0.000000e+00> : vector<64x512xf32>
    %6 = tpu.matmul %4, %5, %cst {dimension_numbers = #tpu.dot_dimension_numbers<[1], [0], [0], [1], [0, 0, 1, 1], [], []>} : vector<64x128xf32>, vector<128x512xf32>, vector<64x512xf32> -> vector<64x512xf32>
    %c0_5 = arith.constant 0 : index
    %c0_6 = arith.constant 0 : index
    %7 = vector.load %arg5[%c0_5, %c0_6] : memref<1x512xf32, #tpu.memory_space<vmem>>, vector<1x512xf32>
    %8 = vector.broadcast %7 : vector<1x512xf32> to vector<64x512xf32>
    %9 = arith.addf %6, %8 : vector<64x512xf32>
    %c0_7 = arith.constant 0 : index
    %c0_8 = arith.constant 0 : index
    %10 = vector.load %arg11[%c0_7, %c0_8] : memref<64x512xf32, #tpu.memory_space<vmem>>, vector<64x512xf32>
    tpu.vector_store %arg11[%c0_7, %c0_8], %9 {strides = array<i32>} : memref<64x512xf32, #tpu.memory_space<vmem>>, vector<64x512xf32>,
    %c0_9 = arith.constant 0 : index
    %c0_10 = arith.constant 0 : index
    %11 = vector.load %arg4[%c0_9, %c0_10] : memref<128x512xf32, #tpu.memory_space<vmem>>, vector<128x512xf32>
    %c0_11 = arith.constant 0 : index
    %c0_12 = arith.constant 0 : index
    %12 = vector.load %arg12[%c0_11, %c0_12] : memref<8x128xf32, #tpu.memory_space<vmem>>, vector<8x128xf32>
    %c0_13 = arith.constant 0 : index
    %c0_14 = arith.constant 0 : index
    %13 = vector.load %arg13[%c0_13, %c0_14] : memref<8x128xf32, #tpu.memory_space<vmem>>, vector<8x128xf32>
    %c0_15 = arith.constant 0 : index
    %c0_16 = arith.constant 0 : index
    %14 = vector.load %arg14[%c0_15, %c0_16] : memref<8x128xf32, #tpu.memory_space<vmem>>, vector<8x128xf32>
    %c0_i32_17 = arith.constant 0 : i32
    %c8_i32 = arith.constant 8 : i32
    %15 = arith.muli %c0_i32_17, %c8_i32 : i32
    %16 = tpu.assume_multiple %15, 8 : i32
    %17 = arith.index_cast %16 : i32 to index
    %c0_18 = arith.constant 0 : index
    %18 = vector.load %arg11[%17, %c0_18] : memref<64x512xf32, #tpu.memory_space<vmem>>, vector<8x512xf32>
    %cst_19 = arith.constant dense<0.000000e+00> : vector<8x512xf32>
    %19 = tpu.matmul %12, %11, %cst_19 {dimension_numbers = #tpu.dot_dimension_numbers<[1], [0], [0], [1], [0, 0, 1, 1], [], []>} : vector<8x128xf32>, vector<128x512xf32>, vector<8x512xf32> -> vector<8x512xf32>
    %20 = arith.addf %18, %19 : vector<8x512xf32>
    %21 = vector.extract_strided_slice %20 {offsets = [0, 0], sizes = [8, 128], strides = [1, 1]} : vector<8x512xf32> to vector<8x128xf32>
    %22 = arith.negf %21 : vector<8x128xf32>
    %23 = math.exp %22 : vector<8x128xf32>
    %cst_20 = arith.constant 1.000000e+00 : f32
    %24 = vector.broadcast %cst_20 : f32 to vector<8x128xf32>
    %25 = arith.addf %24, %23 : vector<8x128xf32>
    %26 = arith.divf %24, %25 : vector<8x128xf32>
    %27 = vector.extract_strided_slice %20 {offsets = [0, 128], sizes = [8, 128], strides = [1, 1]} : vector<8x512xf32> to vector<8x128xf32>
    %28 = arith.negf %27 : vector<8x128xf32>
    %29 = math.exp %28 : vector<8x128xf32>
    %cst_21 = arith.constant 1.000000e+00 : f32
    %30 = vector.broadcast %cst_21 : f32 to vector<8x128xf32>
    %31 = arith.addf %30, %29 : vector<8x128xf32>
    %32 = arith.divf %30, %31 : vector<8x128xf32>
    %33 = vector.extract_strided_slice %20 {offsets = [0, 256], sizes = [8, 128], strides = [1, 1]} : vector<8x512xf32> to vector<8x128xf32>
    %34 = math.tanh %33 : vector<8x128xf32>
    %35 = vector.extract_strided_slice %20 {offsets = [0, 384], sizes = [8, 128], strides = [1, 1]} : vector<8x512xf32> to vector<8x128xf32>
    %36 = arith.negf %35 : vector<8x128xf32>
    %37 = math.exp %36 : vector<8x128xf32>
    %cst_22 = arith.constant 1.000000e+00 : f32
    %38 = vector.broadcast %cst_22 : f32 to vector<8x128xf32>
    %39 = arith.addf %38, %37 : vector<8x128xf32>
    %40 = arith.divf %38, %39 : vector<8x128xf32>
    %41 = arith.mulf %26, %13 : vector<8x128xf32>
    %42 = arith.mulf %32, %34 : vector<8x128xf32>
    %43 = arith.addf %41, %42 : vector<8x128xf32>
    %44 = math.tanh %43 : vector<8x128xf32>
    %45 = arith.mulf %40, %44 : vector<8x128xf32>
    %46 = arith.addf %14, %45 : vector<8x128xf32>
    %c1_i32 = arith.constant 1 : i32
    %c8_i32_23 = arith.constant 8 : i32
    %47 = arith.muli %c1_i32, %c8_i32_23 : i32
    %48 = tpu.assume_multiple %47, 8 : i32
    %49 = arith.index_cast %48 : i32 to index
    %c0_24 = arith.constant 0 : index
    %50 = vector.load %arg11[%49, %c0_24] : memref<64x512xf32, #tpu.memory_space<vmem>>, vector<8x512xf32>
    %cst_25 = arith.constant dense<0.000000e+00> : vector<8x512xf32>
    %51 = tpu.matmul %45, %11, %cst_25 {dimension_numbers = #tpu.dot_dimension_numbers<[1], [0], [0], [1], [0, 0, 1, 1], [], []>} : vector<8x128xf32>, vector<128x512xf32>, vector<8x512xf32> -> vector<8x512xf32>
    %52 = arith.addf %50, %51 : vector<8x512xf32>
    %53 = vector.extract_strided_slice %52 {offsets = [0, 0], sizes = [8, 128], strides = [1, 1]} : vector<8x512xf32> to vector<8x128xf32>
    %54 = arith.negf %53 : vector<8x128xf32>
    %55 = math.exp %54 : vector<8x128xf32>
    %cst_26 = arith.constant 1.000000e+00 : f32
    %56 = vector.broadcast %cst_26 : f32 to vector<8x128xf32>
    %57 = arith.addf %56, %55 : vector<8x128xf32>
    %58 = arith.divf %56, %57 : vector<8x128xf32>
    %59 = vector.extract_strided_slice %52 {offsets = [0, 128], sizes = [8, 128], strides = [1, 1]} : vector<8x512xf32> to vector<8x128xf32>
    %60 = arith.negf %59 : vector<8x128xf32>
    %61 = math.exp %60 : vector<8x128xf32>
    %cst_27 = arith.constant 1.000000e+00 : f32
    %62 = vector.broadcast %cst_27 : f32 to vector<8x128xf32>
    %63 = arith.addf %62, %61 : vector<8x128xf32>
    %64 = arith.divf %62, %63 : vector<8x128xf32>
    %65 = vector.extract_strided_slice %52 {offsets = [0, 256], sizes = [8, 128], strides = [1, 1]} : vector<8x512xf32> to vector<8x128xf32>
    %66 = math.tanh %65 : vector<8x128xf32>
    %67 = vector.extract_strided_slice %52 {offsets = [0, 384], sizes = [8, 128], strides = [1, 1]} : vector<8x512xf32> to vector<8x128xf32>
    %68 = arith.negf %67 : vector<8x128xf32>
    %69 = math.exp %68 : vector<8x128xf32>
    %cst_28 = arith.constant 1.000000e+00 : f32
    %70 = vector.broadcast %cst_28 : f32 to vector<8x128xf32>
    %71 = arith.addf %70, %69 : vector<8x128xf32>
    %72 = arith.divf %70, %71 : vector<8x128xf32>
    %73 = arith.mulf %58, %43 : vector<8x128xf32>
    %74 = arith.mulf %64, %66 : vector<8x128xf32>
    %75 = arith.addf %73, %74 : vector<8x128xf32>
    %76 = math.tanh %75 : vector<8x128xf32>
    %77 = arith.mulf %72, %76 : vector<8x128xf32>
    %78 = arith.addf %46, %77 : vector<8x128xf32>
    %c2_i32 = arith.constant 2 : i32
    %c8_i32_29 = arith.constant 8 : i32
    %79 = arith.muli %c2_i32, %c8_i32_29 : i32
    %80 = tpu.assume_multiple %79, 8 : i32
    %81 = arith.index_cast %80 : i32 to index
    %c0_30 = arith.constant 0 : index
    %82 = vector.load %arg11[%81, %c0_30] : memref<64x512xf32, #tpu.memory_space<vmem>>, vector<8x512xf32>
    %cst_31 = arith.constant dense<0.000000e+00> : vector<8x512xf32>
    %83 = tpu.matmul %77, %11, %cst_31 {dimension_numbers = #tpu.dot_dimension_numbers<[1], [0], [0], [1], [0, 0, 1, 1], [], []>} : vector<8x128xf32>, vector<128x512xf32>, vector<8x512xf32> -> vector<8x512xf32>
    %84 = arith.addf %82, %83 : vector<8x512xf32>
    %85 = vector.extract_strided_slice %84 {offsets = [0, 0], sizes = [8, 128], strides = [1, 1]} : vector<8x512xf32> to vector<8x128xf32>
    %86 = arith.negf %85 : vector<8x128xf32>
    %87 = math.exp %86 : vector<8x128xf32>
    %cst_32 = arith.constant 1.000000e+00 : f32
    %88 = vector.broadcast %cst_32 : f32 to vector<8x128xf32>
    %89 = arith.addf %88, %87 : vector<8x128xf32>
    %90 = arith.divf %88, %89 : vector<8x128xf32>
    %91 = vector.extract_strided_slice %84 {offsets = [0, 128], sizes = [8, 128], strides = [1, 1]} : vector<8x512xf32> to vector<8x128xf32>
    %92 = arith.negf %91 : vector<8x128xf32>
    %93 = math.exp %92 : vector<8x128xf32>
    %cst_33 = arith.constant 1.000000e+00 : f32
    %94 = vector.broadcast %cst_33 : f32 to vector<8x128xf32>
    %95 = arith.addf %94, %93 : vector<8x128xf32>
    %96 = arith.divf %94, %95 : vector<8x128xf32>
    %97 = vector.extract_strided_slice %84 {offsets = [0, 256], sizes = [8, 128], strides = [1, 1]} : vector<8x512xf32> to vector<8x128xf32>
    %98 = math.tanh %97 : vector<8x128xf32>
    %99 = vector.extract_strided_slice %84 {offsets = [0, 384], sizes = [8, 128], strides = [1, 1]} : vector<8x512xf32> to vector<8x128xf32>
    %100 = arith.negf %99 : vector<8x128xf32>
    %101 = math.exp %100 : vector<8x128xf32>
    %cst_34 = arith.constant 1.000000e+00 : f32
    %102 = vector.broadcast %cst_34 : f32 to vector<8x128xf32>
    %103 = arith.addf %102, %101 : vector<8x128xf32>
    %104 = arith.divf %102, %103 : vector<8x128xf32>
    %105 = arith.mulf %90, %75 : vector<8x128xf32>
    %106 = arith.mulf %96, %98 : vector<8x128xf32>
    %107 = arith.addf %105, %106 : vector<8x128xf32>
    %108 = math.tanh %107 : vector<8x128xf32>
    %109 = arith.mulf %104, %108 : vector<8x128xf32>
    %110 = arith.addf %78, %109 : vector<8x128xf32>
    %c3_i32 = arith.constant 3 : i32
    %c8_i32_35 = arith.constant 8 : i32
    %111 = arith.muli %c3_i32, %c8_i32_35 : i32
    %112 = tpu.assume_multiple %111, 8 : i32
    %113 = arith.index_cast %112 : i32 to index
    %c0_36 = arith.constant 0 : index
    %114 = vector.load %arg11[%113, %c0_36] : memref<64x512xf32, #tpu.memory_space<vmem>>, vector<8x512xf32>
    %cst_37 = arith.constant dense<0.000000e+00> : vector<8x512xf32>
    %115 = tpu.matmul %109, %11, %cst_37 {dimension_numbers = #tpu.dot_dimension_numbers<[1], [0], [0], [1], [0, 0, 1, 1], [], []>} : vector<8x128xf32>, vector<128x512xf32>, vector<8x512xf32> -> vector<8x512xf32>
    %116 = arith.addf %114, %115 : vector<8x512xf32>
    %117 = vector.extract_strided_slice %116 {offsets = [0, 0], sizes = [8, 128], strides = [1, 1]} : vector<8x512xf32> to vector<8x128xf32>
    %118 = arith.negf %117 : vector<8x128xf32>
    %119 = math.exp %118 : vector<8x128xf32>
    %cst_38 = arith.constant 1.000000e+00 : f32
    %120 = vector.broadcast %cst_38 : f32 to vector<8x128xf32>
    %121 = arith.addf %120, %119 : vector<8x128xf32>
    %122 = arith.divf %120, %121 : vector<8x128xf32>
    %123 = vector.extract_strided_slice %116 {offsets = [0, 128], sizes = [8, 128], strides = [1, 1]} : vector<8x512xf32> to vector<8x128xf32>
    %124 = arith.negf %123 : vector<8x128xf32>
    %125 = math.exp %124 : vector<8x128xf32>
    %cst_39 = arith.constant 1.000000e+00 : f32
    %126 = vector.broadcast %cst_39 : f32 to vector<8x128xf32>
    %127 = arith.addf %126, %125 : vector<8x128xf32>
    %128 = arith.divf %126, %127 : vector<8x128xf32>
    %129 = vector.extract_strided_slice %116 {offsets = [0, 256], sizes = [8, 128], strides = [1, 1]} : vector<8x512xf32> to vector<8x128xf32>
    %130 = math.tanh %129 : vector<8x128xf32>
    %131 = vector.extract_strided_slice %116 {offsets = [0, 384], sizes = [8, 128], strides = [1, 1]} : vector<8x512xf32> to vector<8x128xf32>
    %132 = arith.negf %131 : vector<8x128xf32>
    %133 = math.exp %132 : vector<8x128xf32>
    %cst_40 = arith.constant 1.000000e+00 : f32
    %134 = vector.broadcast %cst_40 : f32 to vector<8x128xf32>
    %135 = arith.addf %134, %133 : vector<8x128xf32>
    %136 = arith.divf %134, %135 : vector<8x128xf32>
    %137 = arith.mulf %122, %107 : vector<8x128xf32>
    %138 = arith.mulf %128, %130 : vector<8x128xf32>
    %139 = arith.addf %137, %138 : vector<8x128xf32>
    %140 = math.tanh %139 : vector<8x128xf32>
    %141 = arith.mulf %136, %140 : vector<8x128xf32>
    %142 = arith.addf %110, %141 : vector<8x128xf32>
    %c4_i32 = arith.constant 4 : i32
    %c8_i32_41 = arith.constant 8 : i32
    %143 = arith.muli %c4_i32, %c8_i32_41 : i32
    %144 = tpu.assume_multiple %143, 8 : i32
    %145 = arith.index_cast %144 : i32 to index
    %c0_42 = arith.constant 0 : index
    %146 = vector.load %arg11[%145, %c0_42] : memref<64x512xf32, #tpu.memory_space<vmem>>, vector<8x512xf32>
    %cst_43 = arith.constant dense<0.000000e+00> : vector<8x512xf32>
    %147 = tpu.matmul %141, %11, %cst_43 {dimension_numbers = #tpu.dot_dimension_numbers<[1], [0], [0], [1], [0, 0, 1, 1], [], []>} : vector<8x128xf32>, vector<128x512xf32>, vector<8x512xf32> -> vector<8x512xf32>
    %148 = arith.addf %146, %147 : vector<8x512xf32>
    %149 = vector.extract_strided_slice %148 {offsets = [0, 0], sizes = [8, 128], strides = [1, 1]} : vector<8x512xf32> to vector<8x128xf32>
    %150 = arith.negf %149 : vector<8x128xf32>
    %151 = math.exp %150 : vector<8x128xf32>
    %cst_44 = arith.constant 1.000000e+00 : f32
    %152 = vector.broadcast %cst_44 : f32 to vector<8x128xf32>
    %153 = arith.addf %152, %151 : vector<8x128xf32>
    %154 = arith.divf %152, %153 : vector<8x128xf32>
    %155 = vector.extract_strided_slice %148 {offsets = [0, 128], sizes = [8, 128], strides = [1, 1]} : vector<8x512xf32> to vector<8x128xf32>
    %156 = arith.negf %155 : vector<8x128xf32>
    %157 = math.exp %156 : vector<8x128xf32>
    %cst_45 = arith.constant 1.000000e+00 : f32
    %158 = vector.broadcast %cst_45 : f32 to vector<8x128xf32>
    %159 = arith.addf %158, %157 : vector<8x128xf32>
    %160 = arith.divf %158, %159 : vector<8x128xf32>
    %161 = vector.extract_strided_slice %148 {offsets = [0, 256], sizes = [8, 128], strides = [1, 1]} : vector<8x512xf32> to vector<8x128xf32>
    %162 = math.tanh %161 : vector<8x128xf32>
    %163 = vector.extract_strided_slice %148 {offsets = [0, 384], sizes = [8, 128], strides = [1, 1]} : vector<8x512xf32> to vector<8x128xf32>
    %164 = arith.negf %163 : vector<8x128xf32>
    %165 = math.exp %164 : vector<8x128xf32>
    %cst_46 = arith.constant 1.000000e+00 : f32
    %166 = vector.broadcast %cst_46 : f32 to vector<8x128xf32>
    %167 = arith.addf %166, %165 : vector<8x128xf32>
    %168 = arith.divf %166, %167 : vector<8x128xf32>
    %169 = arith.mulf %154, %139 : vector<8x128xf32>
    %170 = arith.mulf %160, %162 : vector<8x128xf32>
    %171 = arith.addf %169, %170 : vector<8x128xf32>
    %172 = math.tanh %171 : vector<8x128xf32>
    %173 = arith.mulf %168, %172 : vector<8x128xf32>
    %174 = arith.addf %142, %173 : vector<8x128xf32>
    %c5_i32 = arith.constant 5 : i32
    %c8_i32_47 = arith.constant 8 : i32
    %175 = arith.muli %c5_i32, %c8_i32_47 : i32
    %176 = tpu.assume_multiple %175, 8 : i32
    %177 = arith.index_cast %176 : i32 to index
    %c0_48 = arith.constant 0 : index
    %178 = vector.load %arg11[%177, %c0_48] : memref<64x512xf32, #tpu.memory_space<vmem>>, vector<8x512xf32>
    %cst_49 = arith.constant dense<0.000000e+00> : vector<8x512xf32>
    %179 = tpu.matmul %173, %11, %cst_49 {dimension_numbers = #tpu.dot_dimension_numbers<[1], [0], [0], [1], [0, 0, 1, 1], [], []>} : vector<8x128xf32>, vector<128x512xf32>, vector<8x512xf32> -> vector<8x512xf32>
    %180 = arith.addf %178, %179 : vector<8x512xf32>
    %181 = vector.extract_strided_slice %180 {offsets = [0, 0], sizes = [8, 128], strides = [1, 1]} : vector<8x512xf32> to vector<8x128xf32>
    %182 = arith.negf %181 : vector<8x128xf32>
    %183 = math.exp %182 : vector<8x128xf32>
    %cst_50 = arith.constant 1.000000e+00 : f32
    %184 = vector.broadcast %cst_50 : f32 to vector<8x128xf32>
    %185 = arith.addf %184, %183 : vector<8x128xf32>
    %186 = arith.divf %184, %185 : vector<8x128xf32>
    %187 = vector.extract_strided_slice %180 {offsets = [0, 128], sizes = [8, 128], strides = [1, 1]} : vector<8x512xf32> to vector<8x128xf32>
    %188 = arith.negf %187 : vector<8x128xf32>
    %189 = math.exp %188 : vector<8x128xf32>
    %cst_51 = arith.constant 1.000000e+00 : f32
    %190 = vector.broadcast %cst_51 : f32 to vector<8x128xf32>
    %191 = arith.addf %190, %189 : vector<8x128xf32>
    %192 = arith.divf %190, %191 : vector<8x128xf32>
    %193 = vector.extract_strided_slice %180 {offsets = [0, 256], sizes = [8, 128], strides = [1, 1]} : vector<8x512xf32> to vector<8x128xf32>
    %194 = math.tanh %193 : vector<8x128xf32>
    %195 = vector.extract_strided_slice %180 {offsets = [0, 384], sizes = [8, 128], strides = [1, 1]} : vector<8x512xf32> to vector<8x128xf32>
    %196 = arith.negf %195 : vector<8x128xf32>
    %197 = math.exp %196 : vector<8x128xf32>
    %cst_52 = arith.constant 1.000000e+00 : f32
    %198 = vector.broadcast %cst_52 : f32 to vector<8x128xf32>
    %199 = arith.addf %198, %197 : vector<8x128xf32>
    %200 = arith.divf %198, %199 : vector<8x128xf32>
    %201 = arith.mulf %186, %171 : vector<8x128xf32>
    %202 = arith.mulf %192, %194 : vector<8x128xf32>
    %203 = arith.addf %201, %202 : vector<8x128xf32>
    %204 = math.tanh %203 : vector<8x128xf32>
    %205 = arith.mulf %200, %204 : vector<8x128xf32>
    %206 = arith.addf %174, %205 : vector<8x128xf32>
    %c6_i32 = arith.constant 6 : i32
    %c8_i32_53 = arith.constant 8 : i32
    %207 = arith.muli %c6_i32, %c8_i32_53 : i32
    %208 = tpu.assume_multiple %207, 8 : i32
    %209 = arith.index_cast %208 : i32 to index
    %c0_54 = arith.constant 0 : index
    %210 = vector.load %arg11[%209, %c0_54] : memref<64x512xf32, #tpu.memory_space<vmem>>, vector<8x512xf32>
    %cst_55 = arith.constant dense<0.000000e+00> : vector<8x512xf32>
    %211 = tpu.matmul %205, %11, %cst_55 {dimension_numbers = #tpu.dot_dimension_numbers<[1], [0], [0], [1], [0, 0, 1, 1], [], []>} : vector<8x128xf32>, vector<128x512xf32>, vector<8x512xf32> -> vector<8x512xf32>
    %212 = arith.addf %210, %211 : vector<8x512xf32>
    %213 = vector.extract_strided_slice %212 {offsets = [0, 0], sizes = [8, 128], strides = [1, 1]} : vector<8x512xf32> to vector<8x128xf32>
    %214 = arith.negf %213 : vector<8x128xf32>
    %215 = math.exp %214 : vector<8x128xf32>
    %cst_56 = arith.constant 1.000000e+00 : f32
    %216 = vector.broadcast %cst_56 : f32 to vector<8x128xf32>
    %217 = arith.addf %216, %215 : vector<8x128xf32>
    %218 = arith.divf %216, %217 : vector<8x128xf32>
    %219 = vector.extract_strided_slice %212 {offsets = [0, 128], sizes = [8, 128], strides = [1, 1]} : vector<8x512xf32> to vector<8x128xf32>
    %220 = arith.negf %219 : vector<8x128xf32>
    %221 = math.exp %220 : vector<8x128xf32>
    %cst_57 = arith.constant 1.000000e+00 : f32
    %222 = vector.broadcast %cst_57 : f32 to vector<8x128xf32>
    %223 = arith.addf %222, %221 : vector<8x128xf32>
    %224 = arith.divf %222, %223 : vector<8x128xf32>
    %225 = vector.extract_strided_slice %212 {offsets = [0, 256], sizes = [8, 128], strides = [1, 1]} : vector<8x512xf32> to vector<8x128xf32>
    %226 = math.tanh %225 : vector<8x128xf32>
    %227 = vector.extract_strided_slice %212 {offsets = [0, 384], sizes = [8, 128], strides = [1, 1]} : vector<8x512xf32> to vector<8x128xf32>
    %228 = arith.negf %227 : vector<8x128xf32>
    %229 = math.exp %228 : vector<8x128xf32>
    %cst_58 = arith.constant 1.000000e+00 : f32
    %230 = vector.broadcast %cst_58 : f32 to vector<8x128xf32>
    %231 = arith.addf %230, %229 : vector<8x128xf32>
    %232 = arith.divf %230, %231 : vector<8x128xf32>
    %233 = arith.mulf %218, %203 : vector<8x128xf32>
    %234 = arith.mulf %224, %226 : vector<8x128xf32>
    %235 = arith.addf %233, %234 : vector<8x128xf32>
    %236 = math.tanh %235 : vector<8x128xf32>
    %237 = arith.mulf %232, %236 : vector<8x128xf32>
    %238 = arith.addf %206, %237 : vector<8x128xf32>
    %c7_i32 = arith.constant 7 : i32
    %c8_i32_59 = arith.constant 8 : i32
    %239 = arith.muli %c7_i32, %c8_i32_59 : i32
    %240 = tpu.assume_multiple %239, 8 : i32
    %241 = arith.index_cast %240 : i32 to index
    %c0_60 = arith.constant 0 : index
    %242 = vector.load %arg11[%241, %c0_60] : memref<64x512xf32, #tpu.memory_space<vmem>>, vector<8x512xf32>
    %cst_61 = arith.constant dense<0.000000e+00> : vector<8x512xf32>
    %243 = tpu.matmul %237, %11, %cst_61 {dimension_numbers = #tpu.dot_dimension_numbers<[1], [0], [0], [1], [0, 0, 1, 1], [], []>} : vector<8x128xf32>, vector<128x512xf32>, vector<8x512xf32> -> vector<8x512xf32>
    %244 = arith.addf %242, %243 : vector<8x512xf32>
    %245 = vector.extract_strided_slice %244 {offsets = [0, 0], sizes = [8, 128], strides = [1, 1]} : vector<8x512xf32> to vector<8x128xf32>
    %246 = arith.negf %245 : vector<8x128xf32>
    %247 = math.exp %246 : vector<8x128xf32>
    %cst_62 = arith.constant 1.000000e+00 : f32
    %248 = vector.broadcast %cst_62 : f32 to vector<8x128xf32>
    %249 = arith.addf %248, %247 : vector<8x128xf32>
    %250 = arith.divf %248, %249 : vector<8x128xf32>
    %251 = vector.extract_strided_slice %244 {offsets = [0, 128], sizes = [8, 128], strides = [1, 1]} : vector<8x512xf32> to vector<8x128xf32>
    %252 = arith.negf %251 : vector<8x128xf32>
    %253 = math.exp %252 : vector<8x128xf32>
    %cst_63 = arith.constant 1.000000e+00 : f32
    %254 = vector.broadcast %cst_63 : f32 to vector<8x128xf32>
    %255 = arith.addf %254, %253 : vector<8x128xf32>
    %256 = arith.divf %254, %255 : vector<8x128xf32>
    %257 = vector.extract_strided_slice %244 {offsets = [0, 256], sizes = [8, 128], strides = [1, 1]} : vector<8x512xf32> to vector<8x128xf32>
    %258 = math.tanh %257 : vector<8x128xf32>
    %259 = vector.extract_strided_slice %244 {offsets = [0, 384], sizes = [8, 128], strides = [1, 1]} : vector<8x512xf32> to vector<8x128xf32>
    %260 = arith.negf %259 : vector<8x128xf32>
    %261 = math.exp %260 : vector<8x128xf32>
    %cst_64 = arith.constant 1.000000e+00 : f32
    %262 = vector.broadcast %cst_64 : f32 to vector<8x128xf32>
    %263 = arith.addf %262, %261 : vector<8x128xf32>
    %264 = arith.divf %262, %263 : vector<8x128xf32>
    %265 = arith.mulf %250, %235 : vector<8x128xf32>
    %266 = arith.mulf %256, %258 : vector<8x128xf32>
    %267 = arith.addf %265, %266 : vector<8x128xf32>
    %268 = math.tanh %267 : vector<8x128xf32>
    %269 = arith.mulf %264, %268 : vector<8x128xf32>
    %270 = arith.addf %238, %269 : vector<8x128xf32>
    %c8_i32_65 = arith.constant 8 : i32
    %c0_66 = arith.constant 0 : index
    %c0_67 = arith.constant 0 : index
    %271 = vector.load %arg12[%c0_66, %c0_67] : memref<8x128xf32, #tpu.memory_space<vmem>>, vector<8x128xf32>
    tpu.vector_store %arg12[%c0_66, %c0_67], %269 {strides = array<i32>} : memref<8x128xf32, #tpu.memory_space<vmem>>, vector<8x128xf32>,
    %c0_68 = arith.constant 0 : index
    %c0_69 = arith.constant 0 : index
    %272 = vector.load %arg13[%c0_68, %c0_69] : memref<8x128xf32, #tpu.memory_space<vmem>>, vector<8x128xf32>
    tpu.vector_store %arg13[%c0_68, %c0_69], %267 {strides = array<i32>} : memref<8x128xf32, #tpu.memory_space<vmem>>, vector<8x128xf32>,
    %c0_70 = arith.constant 0 : index
    %c0_71 = arith.constant 0 : index
    %273 = vector.load %arg14[%c0_70, %c0_71] : memref<8x128xf32, #tpu.memory_space<vmem>>, vector<8x128xf32>
    tpu.vector_store %arg14[%c0_70, %c0_71], %270 {strides = array<i32>} : memref<8x128xf32, #tpu.memory_space<vmem>>, vector<8x128xf32>,
    %c0_i32_72 = arith.constant 0 : i32
    %274 = arith.cmpi eq, %arg1, %c0_i32_72 : i32
    %275 = arith.extui %274 : i1 to i32
    %c0_i32_73 = arith.constant 0 : i32
    %276 = arith.cmpi ne, %275, %c0_i32_73 : i32
    scf.if %276 {
      %cst_74 = arith.constant 1.250000e-01 : f32
      %277 = vector.broadcast %cst_74 : f32 to vector<8x128xf32>
      %278 = arith.mulf %270, %277 : vector<8x128xf32>
      %c0_75 = arith.constant 0 : index
      %c0_76 = arith.constant 0 : index
      %279 = vector.load %arg6[%c0_75, %c0_76] : memref<128x128xf32, #tpu.memory_space<vmem>>, vector<128x128xf32>
      %cst_77 = arith.constant dense<0.000000e+00> : vector<8x128xf32>
      %280 = tpu.matmul %278, %279, %cst_77 {dimension_numbers = #tpu.dot_dimension_numbers<[1], [0], [0], [1], [0, 0, 1, 1], [], []>} : vector<8x128xf32>, vector<128x128xf32>, vector<8x128xf32> -> vector<8x128xf32>
      %c0_78 = arith.constant 0 : index
      %c0_79 = arith.constant 0 : index
      %281 = vector.load %arg7[%c0_78, %c0_79] : memref<1x128xf32, #tpu.memory_space<vmem>>, vector<1x128xf32>
      %282 = vector.broadcast %281 : vector<1x128xf32> to vector<8x128xf32>
      %283 = arith.addf %280, %282 : vector<8x128xf32>
      %cst_80 = arith.constant 0.000000e+00 : f32
      %284 = vector.broadcast %cst_80 : f32 to vector<8x128xf32>
      %285 = arith.maximumf %283, %284 : vector<8x128xf32>
      %c0_81 = arith.constant 0 : index
      %c0_82 = arith.constant 0 : index
      %286 = vector.load %arg8[%c0_81, %c0_82] : memref<128x128xf32, #tpu.memory_space<vmem>>, vector<128x128xf32>
      %cst_83 = arith.constant dense<0.000000e+00> : vector<8x128xf32>
      %287 = tpu.matmul %285, %286, %cst_83 {dimension_numbers = #tpu.dot_dimension_numbers<[1], [0], [0], [1], [0, 0, 1, 1], [], []>} : vector<8x128xf32>, vector<128x128xf32>, vector<8x128xf32> -> vector<8x128xf32>
      %c0_84 = arith.constant 0 : index
      %c0_85 = arith.constant 0 : index
      %288 = vector.load %arg9[%c0_84, %c0_85] : memref<1x128xf32, #tpu.memory_space<vmem>>, vector<1x128xf32>
      %289 = vector.broadcast %288 : vector<1x128xf32> to vector<8x128xf32>
      %290 = arith.addf %287, %289 : vector<8x128xf32>
      %c0_86 = arith.constant 0 : index
      %c0_87 = arith.constant 0 : index
      %291 = vector.load %arg10[%c0_86, %c0_87] : memref<8x128xf32, #tpu.memory_space<vmem>>, vector<8x128xf32>
      tpu.vector_store %arg10[%c0_86, %c0_87], %290 {strides = array<i32>} : memref<8x128xf32, #tpu.memory_space<vmem>>, vector<8x128xf32>,
    } else {
    }
    return
  }
  func.func @transform_0(%arg0: i32, %arg1: i32) -> (i32, i32, i32) {
    %c0_i32 = arith.constant 0 : i32
    %c0_i32_0 = arith.constant 0 : i32
    return %arg1, %arg0, %c0_i32 : i32, i32, i32
  }
  func.func @transform_1(%arg0: i32, %arg1: i32) -> (i32, i32) {
    %c0_i32 = arith.constant 0 : i32
    %c0_i32_0 = arith.constant 0 : i32
    %c0_i32_1 = arith.constant 0 : i32
    return %c0_i32, %c0_i32_0 : i32, i32
  }
  func.func @transform_2(%arg0: i32, %arg1: i32) -> (i32, i32) {
    %c0_i32 = arith.constant 0 : i32
    %c0_i32_0 = arith.constant 0 : i32
    %c0_i32_1 = arith.constant 0 : i32
    return %c0_i32, %c0_i32_0 : i32, i32
  }
  func.func @transform_3(%arg0: i32, %arg1: i32) -> (i32, i32) {
    %c0_i32 = arith.constant 0 : i32
    %c0_i32_0 = arith.constant 0 : i32
    %c0_i32_1 = arith.constant 0 : i32
    return %c0_i32, %c0_i32_0 : i32, i32
  }
  func.func @transform_4(%arg0: i32, %arg1: i32) -> (i32, i32) {
    %c0_i32 = arith.constant 0 : i32
    %c0_i32_0 = arith.constant 0 : i32
    %c0_i32_1 = arith.constant 0 : i32
    return %c0_i32, %c0_i32_0 : i32, i32
  }
  func.func @transform_5(%arg0: i32, %arg1: i32) -> (i32, i32) {
    %c0_i32 = arith.constant 0 : i32
    %c0_i32_0 = arith.constant 0 : i32
    %c0_i32_1 = arith.constant 0 : i32
    return %c0_i32, %c0_i32_0 : i32, i32
  }
  func.func @transform_6(%arg0: i32, %arg1: i32) -> (i32, i32) {
    %c0_i32 = arith.constant 0 : i32
    %c0_i32_0 = arith.constant 0 : i32
    %c0_i32_1 = arith.constant 0 : i32
    return %c0_i32, %c0_i32_0 : i32, i32
  }
  func.func @transform_7(%arg0: i32, %arg1: i32) -> (i32, i32) {
    %c0_i32 = arith.constant 0 : i32
    %c0_i32_0 = arith.constant 0 : i32
    %c0_i32_1 = arith.constant 0 : i32
    return %c0_i32, %c0_i32_0 : i32, i32
  }
  func.func @transform_8(%arg0: i32, %arg1: i32) -> (i32, i32) {
    %c0_i32 = arith.constant 0 : i32
    %c0_i32_0 = arith.constant 0 : i32
    return %arg0, %c0_i32 : i32, i32
  }
}

</mosaic_0001>

<bundles_post_ra>
// kernel: tpu_custom_call.1
= control target key start
LH: loop header
LB: loop body
LE: loop exit
PB: predicated region body
PF: predicated region fallthrough
CT: control target
= control target key end

     0   :  { %13 = vsyncpa [#allocation7], 0  ;;  %s3733_s0 = inlined_call_operand.hbm [shape: f32[8,8,128], index: 0, kind: input, shape index: {}]   ;;  %s3734_s1 = inlined_call_operand.hbm [shape: f32[128,512], index: 1, kind: input, shape index: {}]   ;;  %s3735_s2 = inlined_call_operand.hbm [shape: f32[128,512], index: 2, kind: input, shape index: {}]   ;;  %s3736_s3 = inlined_call_operand.vmem [shape: f32[1,512], index: 3, kind: input, shape index: {}]   ;;  %s3737_s4 = inlined_call_operand.hbm [shape: f32[128,128], index: 4, kind: input, shape index: {}]   ;;  %s3738_s5 = inlined_call_operand.vmem [shape: f32[1,128], index: 5, kind: input, shape index: {}]   ;;  %s3739_s6 = inlined_call_operand.hbm [shape: f32[128,128], index: 6, kind: input, shape index: {}]   ;;  %s3740_s7 = inlined_call_operand.vmem [shape: f32[1,128], index: 7, kind: input, shape index: {}]   ;;  %s3741_s8 = inlined_call_operand.hbm [shape: f32[8,128], index: 8, kind: output, shape index: {}]  }
   0x1   :  { %14 = vsyncpa [#allocation10], 0 }
   0x2   :  { %15 = vsyncpa [#allocation13], 0 }
   0x3   :  { %16 = vsyncpa [#allocation8], 0  ;;  %s2629_s27 = smov [#allocation9]  }
   0x4   :  { %s34_s28 = sshll.u32 %s2629_s27, 4  ;;  %s35_s28 = int_to_ptr.vmem [resolvable:$true] %s34_s28 }
   0x5   :  { %s2509_s29 = scalar_lea.vmem %s35_s28, 8192  ;;  %p2514_p1 = scmp.lt.s32.totalorder %s35_s28, %s35_s28 }
   0x6   :  { %p2510_p0 = scmp.ne.s32.totalorder %s35_s28, %s2509_s29  ;;  %p2515_p2 = scmp.lt.s32.totalorder %s2509_s29, %s2509_s29 }
   0x8   :  { %p2516_p3 = por %p2515_p2, %p2514_p1 }
   0xa   :  { %p2517_p4 = pnand %p2516_p3, %p2510_p0 }
   0xc   :  { %2520 = shalt.err (!%p2517_p4)
}
   0xd   :  { %s2630_s30 = smov 512   ;;  %s2631_s9 = smov 32  }
   0xe   :  { %40 = dma.hbm_to_vmem [thread:$0]  %s3734_s1, 8192, %s35_s28, [#allocation10], %s2630_s30, %s2630_s30, %s2631_s9  }
   0xf   :  { %s2632_s12 = smov [#allocation12]   ;;  %s2633_s14 = smov [#allocation6]  }
  0x10   :  { %s60_s13 = sshll.u32 %s2632_s12, 4  ;;  %s22_s15 = sshll.u32 %s2633_s14, 4  ;;  %s61_s13 = int_to_ptr.vmem [resolvable:$true] %s60_s13  ;;  %s23_s15 = int_to_ptr.vmem [resolvable:$true] %s22_s15 }
  0x11   :  { %s2529_s16 = scalar_lea.vmem %s61_s13, 2048  ;;  %p2534_p6 = scmp.lt.s32.totalorder %s61_s13, %s61_s13 }
  0x12   :  { %p2530_p5 = scmp.ne.s32.totalorder %s61_s13, %s2529_s16  ;;  %p2535_p7 = scmp.lt.s32.totalorder %s2529_s16, %s2529_s16 }
  0x14   :  { %p2536_p8 = por %p2535_p7, %p2534_p6 }
  0x16   :  { %p2537_p9 = pnand %p2536_p8, %p2530_p5 }
  0x18   :  { %2540 = shalt.err (!%p2537_p9)
}
  0x19   :  { %s2634_s17 = smov 128   ;;  %s2635_s18 = smov 8  }
  0x1a   :  { %66 = dma.hbm_to_vmem [thread:$0]  %s3737_s4, 2048, %s61_s13, [#allocation13], %s2634_s17, %s2634_s17, %s2635_s18  }
  0x1b   :  { %s2549_s1 = scalar_lea.vmem %s23_s15, 1024  ;;  %p2554_p11 = scmp.lt.s32.totalorder %s23_s15, %s23_s15 }
  0x1c   :  { %p2550_p10 = scmp.ne.s32.totalorder %s23_s15, %s2549_s1  ;;  %p2555_p12 = scmp.lt.s32.totalorder %s2549_s1, %s2549_s1 }
  0x1e   :  { %p2556_p13 = por %p2555_p12, %p2554_p11 }
  0x20   :  { %p2557_p0 = pnand %p2556_p13, %p2550_p10 }
  0x22   :  { %2560 = shalt.err (!%p2557_p0)
}
  0x23   :  { %28 = dma.hbm_to_vmem [thread:$0]  %s3733_s0, 1024, %s23_s15, [#allocation7], %s2634_s17, %s2634_s17, %s2635_s18  }
  0x24   :  { %s2636_s23 = smov [#allocation11]   ;;  %s2637_s25 = smov [#allocation14]  }
  0x25   :  { %s46_s24 = sshll.u32 %s2636_s23, 4  ;;  %s74_s4 = sshll.u32 %s2637_s25, 4  ;;  %s47_s24 = int_to_ptr.vmem [resolvable:$true] %s46_s24  ;;  %s75_s4 = int_to_ptr.vmem [resolvable:$true] %s74_s4 }
  0x26   :  { %s2569_s26 = scalar_lea.vmem %s47_s24, 8192  ;;  %p2574_p2 = scmp.lt.s32.totalorder %s47_s24, %s47_s24 }
  0x27   :  { %p2570_p1 = scmp.ne.s32.totalorder %s47_s24, %s2569_s26  ;;  %p2575_p3 = scmp.lt.s32.totalorder %s2569_s26, %s2569_s26 }
  0x29   :  { %p2576_p4 = por %p2575_p3, %p2574_p2 }
  0x2b   :  { %p2577_p5 = pnand %p2576_p4, %p2570_p1 }
  0x2d   :  { %2580 = shalt.err (!%p2577_p5)
}
  0x2e   :  { %52 = dma.hbm_to_vmem [thread:$0]  %s3735_s2, 8192, %s47_s24, [#allocation10], %s2630_s30, %s2630_s30, %s2631_s9  }
  0x2f   :  { %s2589_s0 = scalar_lea.vmem %s75_s4, 2048  ;;  %p2594_p7 = scmp.lt.s32.totalorder %s75_s4, %s75_s4 }
  0x30   :  { %p2590_p6 = scmp.ne.s32.totalorder %s75_s4, %s2589_s0  ;;  %p2595_p8 = scmp.lt.s32.totalorder %s2589_s0, %s2589_s0 }
  0x32   :  { %p2596_p9 = por %p2595_p8, %p2594_p7 }
  0x34   :  { %p2597_p10 = pnand %p2596_p9, %p2590_p6 }
  0x36   :  { %2600 = shalt.err (!%p2597_p10)
}
  0x37   :  { %80 = dma.hbm_to_vmem [thread:$0]  %s3739_s6, 2048, %s75_s4, [#allocation13], %s2634_s17, %s2634_s17, %s2635_s18  }
  0x38   :  { %2621 = dma.done.wait [#allocation7], 1024  }
  0x39   :  { %2622 = vsyncadd [#allocation7], 4294966272 }
  0x3a   :  { %2623 = dma.done.wait [#allocation10], 16384  }
  0x3b   :  { %2624 = vsyncadd [#allocation10], 4294950912 }
  0x3c   :  { %2625 = dma.done.wait [#allocation13], 4096  }
  0x3d   :  { %2626 = vsyncadd [#allocation13], 4294963200  ;;  %v3742_v0 = vmov 0.0   ;;  %v174_v1 = vld [vmem:[#allocation9 + $0x1e8] sm:$0xff]  ;;  %v176_v2 = vld [vmem:[#allocation9 + $0x1f8] sm:$0xff]  ;;  %vm2639_vm0 = vmmov 0  }
  0x3e   :  { %263 = vmatprep.mubr.f32.mxu0 %v3742_v0  ;;  %376 = vmatprep.mubr.f32.mxu1 %v3742_v0  ;;  %v173_v3 = vld [vmem:[#allocation9 + $0x1e0] sm:$0xff]  ;;  %v175_v4 = vld [vmem:[#allocation9 + $0x1f0] sm:$0xff]  ;;  %v170_v5 = vld [vmem:[#allocation9 + $0x1c8] sm:$0xff]  ;;  %s2640_s12 = smov [#allocation15]  }
  0x3f   :  { %199 = vmatprep.subr.mxu0 %v174_v1  ;;  %312 = vmatprep.subr.mxu1 %v176_v2  ;;  %v172_v6 = vld [vmem:[#allocation9 + $0x1d8] sm:$0xff]  ;;  %v169_v7 = vld [vmem:[#allocation9 + $0x1c0] sm:$0xff]  ;;  %v171_v8 = vld [vmem:[#allocation9 + $0x1d0] sm:$0xff]  ;;  %s2149_s13 = sshll.u32 %s2640_s12, 4  ;;  %s2150_s13 = int_to_ptr.vmem [resolvable:$true] %s2149_s13 }
  0x40   :  { %200 = vmatpush1.msra.mxu0 %v173_v3  ;;  %313 = vmatpush1.msra.mxu1 %v175_v4  ;;  %v166_v9 = vld [vmem:[#allocation9 + $0x1a8] sm:$0xff]  ;;  %v168_v10 = vld [vmem:[#allocation9 + $0x1b8] sm:$0xff]  ;;  %v165_v11 = vld [vmem:[#allocation9 + $0x1a0] sm:$0xff]  ;;  %s2601_s14 = scalar_lea.vmem %s2150_s13, 128  ;;  %p2606_p12 = scmp.lt.s32.totalorder %s2150_s13, %s2150_s13 }
  0x41   :  { %201 = vmatprep.subr.mxu0 %v170_v5  ;;  %314 = vmatprep.subr.mxu1 %v172_v6  ;;  %v167_v12 = vld [vmem:[#allocation9 + $0x1b0] sm:$0xff]  ;;  %v162_v13 = vld [vmem:[#allocation9 + $0x188] sm:$0xff]  ;;  %v164_v14 = vld [vmem:[#allocation9 + $0x198] sm:$0xff]  ;;  %p2602_p11 = scmp.ne.s32.totalorder %s2150_s13, %s2601_s14  ;;  %p2607_p13 = scmp.lt.s32.totalorder %s2601_s14, %s2601_s14 }
  0x42   :  { %202 = vmatpush1.msra.mxu0 %v169_v7  ;;  %315 = vmatpush1.msra.mxu1 %v171_v8  ;;  %v161_v15 = vld [vmem:[#allocation9 + $0x180] sm:$0xff]  ;;  %v163_v16 = vld [vmem:[#allocation9 + $0x190] sm:$0xff]  ;;  %v158_v17 = vld [vmem:[#allocation9 + $0x168] sm:$0xff] }
  0x43   :  { %203 = vmatprep.subr.mxu0 %v166_v9  ;;  %316 = vmatprep.subr.mxu1 %v168_v10  ;;  %v160_v18 = vld [vmem:[#allocation9 + $0x178] sm:$0xff]  ;;  %v157_v19 = vld [vmem:[#allocation9 + $0x160] sm:$0xff]  ;;  %v159_v20 = vld [vmem:[#allocation9 + $0x170] sm:$0xff]  ;;  %p2608_p0 = por %p2607_p13, %p2606_p12 }
  0x44   :  { %204 = vmatpush1.msra.mxu0 %v165_v11  ;;  %317 = vmatpush1.msra.mxu1 %v167_v12  ;;  %v154_v21 = vld [vmem:[#allocation9 + $0x148] sm:$0xff]  ;;  %v156_v22 = vld [vmem:[#allocation9 + $0x158] sm:$0xff]  ;;  %v153_v23 = vld [vmem:[#allocation9 + $0x140] sm:$0xff] }
  0x45   :  { %205 = vmatprep.subr.mxu0 %v162_v13  ;;  %318 = vmatprep.subr.mxu1 %v164_v14  ;;  %v155_v24 = vld [vmem:[#allocation9 + $0x150] sm:$0xff]  ;;  %v150_v25 = vld [vmem:[#allocation9 + $0x128] sm:$0xff]  ;;  %v152_v26 = vld [vmem:[#allocation9 + $0x138] sm:$0xff]  ;;  %p2609_p1 = pnand %p2608_p0, %p2602_p11 }
  0x46   :  { %206 = vmatpush1.msra.mxu0 %v161_v15  ;;  %319 = vmatpush1.msra.mxu1 %v163_v16  ;;  %v149_v27 = vld [vmem:[#allocation9 + $0x120] sm:$0xff]  ;;  %v151_v28 = vld [vmem:[#allocation9 + $0x130] sm:$0xff]  ;;  %v146_v29 = vld [vmem:[#allocation9 + $0x108] sm:$0xff] }
  0x47   :  { %207 = vmatprep.subr.mxu0 %v158_v17  ;;  %320 = vmatprep.subr.mxu1 %v160_v18  ;;  %v148_v30 = vld [vmem:[#allocation9 + $0x118] sm:$0xff]  ;;  %v145_v31 = vld [vmem:[#allocation9 + $0x100] sm:$0xff]  ;;  %v147_v32 = vld [vmem:[#allocation9 + $0x110] sm:$0xff] }
  0x48   :  { %208 = vmatpush1.msra.mxu0 %v157_v19  ;;  %321 = vmatpush1.msra.mxu1 %v159_v20  ;;  %v142_v33 = vld [vmem:[#allocation9 + $0xe8] sm:$0xff]  ;;  %v144_v34 = vld [vmem:[#allocation9 + $0xf8] sm:$0xff]  ;;  %v141_v35 = vld [vmem:[#allocation9 + $0xe0] sm:$0xff] }
  0x49   :  { %209 = vmatprep.subr.mxu0 %v154_v21  ;;  %322 = vmatprep.subr.mxu1 %v156_v22  ;;  %v143_v36 = vld [vmem:[#allocation9 + $0xf0] sm:$0xff]  ;;  %v138_v37 = vld [vmem:[#allocation9 + $0xc8] sm:$0xff]  ;;  %v140_v38 = vld [vmem:[#allocation9 + $0xd8] sm:$0xff] }
  0x4a   :  { %210 = vmatpush1.msra.mxu0 %v153_v23  ;;  %323 = vmatpush1.msra.mxu1 %v155_v24  ;;  %v137_v39 = vld [vmem:[#allocation9 + $0xc0] sm:$0xff]  ;;  %v139_v40 = vld [vmem:[#allocation9 + $0xd0] sm:$0xff]  ;;  %v134_v41 = vld [vmem:[#allocation9 + $0xa8] sm:$0xff] }
  0x4b   :  { %211 = vmatprep.subr.mxu0 %v150_v25  ;;  %324 = vmatprep.subr.mxu1 %v152_v26  ;;  %v136_v42 = vld [vmem:[#allocation9 + $0xb8] sm:$0xff]  ;;  %v133_v43 = vld [vmem:[#allocation9 + $0xa0] sm:$0xff]  ;;  %v135_v44 = vld [vmem:[#allocation9 + $0xb0] sm:$0xff] }
  0x4c   :  { %212 = vmatpush1.msra.mxu0 %v149_v27  ;;  %325 = vmatpush1.msra.mxu1 %v151_v28  ;;  %v130_v45 = vld [vmem:[#allocation9 + $0x88] sm:$0xff]  ;;  %v132_v46 = vld [vmem:[#allocation9 + $0x98] sm:$0xff]  ;;  %v129_v47 = vld [vmem:[#allocation9 + $0x80] sm:$0xff] }
  0x4d   :  { %213 = vmatprep.subr.mxu0 %v146_v29  ;;  %326 = vmatprep.subr.mxu1 %v148_v30  ;;  %v131_v48 = vld [vmem:[#allocation9 + $0x90] sm:$0xff]  ;;  %v126_v49 = vld [vmem:[#allocation9 + $0x68] sm:$0xff]  ;;  %v128_v50 = vld [vmem:[#allocation9 + $0x78] sm:$0xff] }
  0x4e   :  { %214 = vmatpush1.msra.mxu0 %v145_v31  ;;  %327 = vmatpush1.msra.mxu1 %v147_v32  ;;  %v125_v51 = vld [vmem:[#allocation9 + $0x60] sm:$0xff]  ;;  %v127_v52 = vld [vmem:[#allocation9 + $0x70] sm:$0xff]  ;;  %v122_v53 = vld [vmem:[#allocation9 + $0x48] sm:$0xff] }
  0x4f   :  { %215 = vmatprep.subr.mxu0 %v142_v33  ;;  %328 = vmatprep.subr.mxu1 %v144_v34  ;;  %v124_v54 = vld [vmem:[#allocation9 + $0x58] sm:$0xff]  ;;  %v121_v55 = vld [vmem:[#allocation9 + $0x40] sm:$0xff]  ;;  %v123_v56 = vld [vmem:[#allocation9 + $0x50] sm:$0xff] }
  0x50   :  { %216 = vmatpush1.msra.mxu0 %v141_v35  ;;  %329 = vmatpush1.msra.mxu1 %v143_v36  ;;  %v118_v57 = vld [vmem:[#allocation9 + $0x28] sm:$0xff]  ;;  %v120_v58 = vld [vmem:[#allocation9 + $0x38] sm:$0xff]  ;;  %v117_v59 = vld [vmem:[#allocation9 + $0x20] sm:$0xff] }
  0x51   :  { %217 = vmatprep.subr.mxu0 %v138_v37  ;;  %330 = vmatprep.subr.mxu1 %v140_v38  ;;  %v119_v60 = vld [vmem:[#allocation9 + $0x30] sm:$0xff]  ;;  %v114_v61 = vld [vmem:[#allocation9 + $0x8] sm:$0xff]  ;;  %v116_v62 = vld [vmem:[#allocation9 + $0x18] sm:$0xff] }
  0x52   :  { %218 = vmatpush1.msra.mxu0 %v137_v39  ;;  %331 = vmatpush1.msra.mxu1 %v139_v40  ;;  %v113_v63 = vld [vmem:[#allocation9] sm:$0xff]  ;;  %v115_v1 = vld [vmem:[#allocation9 + $0x10] sm:$0xff]  ;;  %v2718_v3 = vld [vmem:[#allocation11 + $0x1e8] sm:$0xff] }
  0x53   :  { %219 = vmatprep.subr.mxu0 %v134_v41  ;;  %332 = vmatprep.subr.mxu1 %v136_v42  ;;  %v105_v2 = vld [vmem:[#allocation6] sm:$0xff]  ;;  %3835 = vst [vmem:[#allocation20_spill] sm:$0xff] %v2718_v3  ;;  %v2720_v4 = vld [vmem:[#allocation11 + $0x1f8] sm:$0xff]  ;;  %v2724_v6 = vld [vmem:[#allocation11 + $0x1f0] sm:$0xff] }
  0x54   :  { %220 = vmatpush1.msra.mxu0 %v133_v43  ;;  %333 = vmatpush1.msra.mxu1 %v135_v44  ;;  %3836 = vst [vmem:[#allocation21_spill] sm:$0xff] %v2720_v4  ;;  %v2722_v5 = vld [vmem:[#allocation11 + $0x1e0] sm:$0xff]  ;;  %v2726_v7 = vld [vmem:[#allocation11 + $0x1c8] sm:$0xff]  ;;  %v2728_v8 = vld [vmem:[#allocation11 + $0x1d8] sm:$0xff] }
  0x55   :  { %221 = vmatprep.subr.mxu0 %v130_v45  ;;  %334 = vmatprep.subr.mxu1 %v132_v46  ;;  %v2734_v9 = vld [vmem:[#allocation11 + $0x1c0] sm:$0xff]  ;;  %v2736_v10 = vld [vmem:[#allocation11 + $0x1d0] sm:$0xff]  ;;  %v106_v11 = vld [vmem:[#allocation6 + $0x8] sm:$0xff] }
  0x56   :  { %222 = vmatpush1.msra.mxu0 %v129_v47  ;;  %335 = vmatpush1.msra.mxu1 %v131_v48  ;;  %v2742_v12 = vld [vmem:[#allocation11 + $0x1a8] sm:$0xff]  ;;  %v2744_v13 = vld [vmem:[#allocation11 + $0x1b8] sm:$0xff]  ;;  %v2748_v14 = vld [vmem:[#allocation11 + $0x1a0] sm:$0xff] }
  0x57   :  { %223 = vmatprep.subr.mxu0 %v126_v49  ;;  %336 = vmatprep.subr.mxu1 %v128_v50  ;;  %v2750_v15 = vld [vmem:[#allocation11 + $0x1b0] sm:$0xff]  ;;  %v2752_v16 = vld [vmem:[#allocation11 + $0x188] sm:$0xff]  ;;  %v2754_v17 = vld [vmem:[#allocation11 + $0x198] sm:$0xff] }
  0x58   :  { %224 = vmatpush1.msra.mxu0 %v125_v51  ;;  %337 = vmatpush1.msra.mxu1 %v127_v52  ;;  %v2760_v18 = vld [vmem:[#allocation11 + $0x180] sm:$0xff]  ;;  %v2762_v19 = vld [vmem:[#allocation11 + $0x190] sm:$0xff]  ;;  %v2768_v21 = vld [vmem:[#allocation11 + $0x168] sm:$0xff] }
  0x59   :  { %225 = vmatprep.subr.mxu0 %v122_v53  ;;  %338 = vmatprep.subr.mxu1 %v124_v54  ;;  %v107_v20 = vld [vmem:[#allocation6 + $0x10] sm:$0xff]  ;;  %v2770_v22 = vld [vmem:[#allocation11 + $0x178] sm:$0xff]  ;;  %v2774_v23 = vld [vmem:[#allocation11 + $0x160] sm:$0xff] }
  0x5a   :  { %226 = vmatpush1.msra.mxu0 %v121_v55  ;;  %339 = vmatpush1.msra.mxu1 %v123_v56  ;;  %v2776_v24 = vld [vmem:[#allocation11 + $0x170] sm:$0xff]  ;;  %v2778_v25 = vld [vmem:[#allocation11 + $0x148] sm:$0xff]  ;;  %v2780_v26 = vld [vmem:[#allocation11 + $0x158] sm:$0xff] }
  0x5b   :  { %227 = vmatprep.subr.mxu0 %v118_v57  ;;  %340 = vmatprep.subr.mxu1 %v120_v58  ;;  %v2786_v27 = vld [vmem:[#allocation11 + $0x140] sm:$0xff]  ;;  %v2788_v28 = vld [vmem:[#allocation11 + $0x150] sm:$0xff]  ;;  %v108_v29 = vld [vmem:[#allocation6 + $0x18] sm:$0xff] }
  0x5c   :  { %228 = vmatpush1.msra.mxu0 %v117_v59  ;;  %341 = vmatpush1.msra.mxu1 %v119_v60  ;;  %v2794_v30 = vld [vmem:[#allocation11 + $0x128] sm:$0xff]  ;;  %v2796_v31 = vld [vmem:[#allocation11 + $0x138] sm:$0xff]  ;;  %v2800_v32 = vld [vmem:[#allocation11 + $0x120] sm:$0xff] }
  0x5d   :  { %229 = vmatprep.subr.mxu0 %v114_v61  ;;  %342 = vmatprep.subr.mxu1 %v116_v62  ;;  %v2802_v33 = vld [vmem:[#allocation11 + $0x130] sm:$0xff]  ;;  %v2804_v34 = vld [vmem:[#allocation11 + $0x108] sm:$0xff]  ;;  %v2806_v35 = vld [vmem:[#allocation11 + $0x118] sm:$0xff] }
  0x5e   :  { %230 = vmatpush1.msra.mxu0 %v113_v63  ;;  %343 = vmatpush1.msra.mxu1 %v115_v1  ;;  %v2812_v36 = vld [vmem:[#allocation11 + $0x100] sm:$0xff]  ;;  %v2814_v37 = vld [vmem:[#allocation11 + $0x110] sm:$0xff]  ;;  %v2820_v39 = vld [vmem:[#allocation11 + $0xe8] sm:$0xff] }
  0x5f   :  { %264 = vmatmul.mubr.f32.vlgmr.msra.gmra.mxu0 %v105_v2  ;;  %377 = vmatmul.mubr.f32.vlgmr.msra.gmra.mxu1 %v105_v2  ;;  %v109_v38 = vld [vmem:[#allocation6 + $0x20] sm:$0xff]  ;;  %v2822_v40 = vld [vmem:[#allocation11 + $0xf8] sm:$0xff]  ;;  %v2828_v42 = vld [vmem:[#allocation11 + $0xf0] sm:$0xff] }
  0x60   :  { %531 = vmatprep.subr.mxu0 %v2718_v3  ;;  %602 = vmatprep.subr.mxu1 %v2720_v4  ;;  %v2826_v41 = vld [vmem:[#allocation11 + $0xe0] sm:$0xff]  ;;  %v2830_v43 = vld [vmem:[#allocation11 + $0xc8] sm:$0xff]  ;;  %v2832_v44 = vld [vmem:[#allocation11 + $0xd8] sm:$0xff] }
  0x61   :  { %532 = vmatpush1.msra.mxu0 %v2722_v5  ;;  %603 = vmatpush1.msra.mxu1 %v2724_v6  ;;  %v2838_v45 = vld [vmem:[#allocation11 + $0xc0] sm:$0xff]  ;;  %v2840_v46 = vld [vmem:[#allocation11 + $0xd0] sm:$0xff]  ;;  %v110_v47 = vld [vmem:[#allocation6 + $0x28] sm:$0xff] }
  0x62   :  { %533 = vmatprep.subr.mxu0 %v2726_v7  ;;  %604 = vmatprep.subr.mxu1 %v2728_v8  ;;  %v2846_v48 = vld [vmem:[#allocation11 + $0xa8] sm:$0xff]  ;;  %v2848_v49 = vld [vmem:[#allocation11 + $0xb8] sm:$0xff]  ;;  %v2852_v50 = vld [vmem:[#allocation11 + $0xa0] sm:$0xff] }
  0x63   :  { %269 = vmatprep.mubr.f32.mxu0 %v3742_v0  ;;  %382 = vmatprep.mubr.f32.mxu1 %v3742_v0  ;;  %v2854_v51 = vld [vmem:[#allocation11 + $0xb0] sm:$0xff]  ;;  %v2856_v52 = vld [vmem:[#allocation11 + $0x88] sm:$0xff]  ;;  %v2858_v53 = vld [vmem:[#allocation11 + $0x98] sm:$0xff] }
  0x64   :  { %534 = vmatpush1.msra.mxu0 %v2734_v9  ;;  %605 = vmatpush1.msra.mxu1 %v2736_v10  ;;  %3837 = vst [vmem:[#allocation22_spill] sm:$0xff] %v2856_v52  ;;  %3838 = vst [vmem:[#allocation23_spill] sm:$0xff] %v2858_v53  ;;  %v2864_v54 = vld [vmem:[#allocation11 + $0x80] sm:$0xff]  ;;  %v2866_v55 = vld [vmem:[#allocation11 + $0x90] sm:$0xff] }
  0x65   :  { %270 = vmatmul.mubr.f32.gmra.mxu0 %v106_v11  ;;  %383 = vmatmul.mubr.f32.gmra.mxu1 %v106_v11  ;;  %3839 = vst [vmem:[#allocation24_spill] sm:$0xff] %v2864_v54  ;;  %3840 = vst [vmem:[#allocation25_spill] sm:$0xff] %v2866_v55  ;;  %v111_v56 = vld [vmem:[#allocation6 + $0x30] sm:$0xff]  ;;  %v2872_v57 = vld [vmem:[#allocation11 + $0x68] sm:$0xff] }
  0x66   :  { %535 = vmatprep.subr.mxu0 %v2742_v12  ;;  %606 = vmatprep.subr.mxu1 %v2744_v13  ;;  %3841 = vst [vmem:[#allocation26_spill] sm:$0xff] %v2872_v57  ;;  %v2874_v58 = vld [vmem:[#allocation11 + $0x78] sm:$0xff]  ;;  %v2878_v59 = vld [vmem:[#allocation11 + $0x60] sm:$0xff]  ;;  %v2880_v60 = vld [vmem:[#allocation11 + $0x70] sm:$0xff] }
  0x67   :  { %536 = vmatpush1.msra.mxu0 %v2748_v14  ;;  %607 = vmatpush1.msra.mxu1 %v2750_v15  ;;  %3842 = vst [vmem:[#allocation27_spill] sm:$0xff] %v2874_v58  ;;  %3843 = vst [vmem:[#allocation28_spill] sm:$0xff] %v2878_v59  ;;  %v2882_v61 = vld [vmem:[#allocation11 + $0x48] sm:$0xff]  ;;  %v2884_v62 = vld [vmem:[#allocation11 + $0x58] sm:$0xff] }
  0x68   :  { %537 = vmatprep.subr.mxu0 %v2752_v16  ;;  %608 = vmatprep.subr.mxu1 %v2754_v17  ;;  %3844 = vst [vmem:[#allocation29_spill] sm:$0xff] %v2880_v60  ;;  %3845 = vst [vmem:[#allocation30_spill] sm:$0xff] %v2882_v61  ;;  %v2890_v63 = vld [vmem:[#allocation11 + $0x40] sm:$0xff]  ;;  %v2892_v1 = vld [vmem:[#allocation11 + $0x50] sm:$0xff] }
  0x69   :  { %275 = vmatprep.mubr.f32.mxu0 %v3742_v0  ;;  %388 = vmatprep.mubr.f32.mxu1 %v3742_v0  ;;  %3846 = vst [vmem:[#allocation31_spill] sm:$0xff] %v2884_v62  ;;  %3847 = vst [vmem:[#allocation32_spill] sm:$0xff] %v2890_v63  ;;  %v112_v2 = vld [vmem:[#allocation6 + $0x38] sm:$0xff]  ;;  %v2898_v11 = vld [vmem:[#allocation11 + $0x28] sm:$0xff] }
  0x6a   :  { %538 = vmatpush1.msra.mxu0 %v2760_v18  ;;  %609 = vmatpush1.msra.mxu1 %v2762_v19  ;;  %3848 = vst [vmem:[#allocation33_spill] sm:$0xff] %v2892_v1  ;;  %3849 = vst [vmem:[#allocation34_spill] sm:$0xff] %v2898_v11 }
  0x6b   :  { %276 = vmatmul.mubr.f32.gmra.mxu0 %v107_v20  ;;  %389 = vmatmul.mubr.f32.gmra.mxu1 %v107_v20  ;;  %v2900_v20 = vld [vmem:[#allocation11 + $0x38] sm:$0xff] }
  0x6c   :  { %539 = vmatprep.subr.mxu0 %v2768_v21  ;;  %610 = vmatprep.subr.mxu1 %v2770_v22  ;;  %3850 = vst [vmem:[#allocation35_spill] sm:$0xff] %v2900_v20 }
  0x6d   :  { %540 = vmatpush1.msra.mxu0 %v2774_v23  ;;  %611 = vmatpush1.msra.mxu1 %v2776_v24 }
  0x6e   :  { %541 = vmatprep.subr.mxu0 %v2778_v25  ;;  %612 = vmatprep.subr.mxu1 %v2780_v26 }
  0x6f   :  { %281 = vmatprep.mubr.f32.mxu0 %v3742_v0  ;;  %394 = vmatprep.mubr.f32.mxu1 %v3742_v0 }
  0x70   :  { %542 = vmatpush1.msra.mxu0 %v2786_v27  ;;  %613 = vmatpush1.msra.mxu1 %v2788_v28 }
  0x71   :  { %282 = vmatmul.mubr.f32.gmra.mxu0 %v108_v29  ;;  %395 = vmatmul.mubr.f32.gmra.mxu1 %v108_v29  ;;  %v2904_v29 = vld [vmem:[#allocation11 + $0x20] sm:$0xff] }
  0x72   :  { %543 = vmatprep.subr.mxu0 %v2794_v30  ;;  %614 = vmatprep.subr.mxu1 %v2796_v31  ;;  %3851 = vst [vmem:[#allocation36_spill] sm:$0xff] %v2904_v29 }
  0x73   :  { %544 = vmatpush1.msra.mxu0 %v2800_v32  ;;  %615 = vmatpush1.msra.mxu1 %v2802_v33 }
  0x74   :  { %545 = vmatprep.subr.mxu0 %v2804_v34  ;;  %616 = vmatprep.subr.mxu1 %v2806_v35 }
  0x75   :  { %287 = vmatprep.mubr.f32.mxu0 %v3742_v0  ;;  %400 = vmatprep.mubr.f32.mxu1 %v3742_v0 }
  0x76   :  { %546 = vmatpush1.msra.mxu0 %v2812_v36  ;;  %617 = vmatpush1.msra.mxu1 %v2814_v37 }
  0x77   :  { %288 = vmatmul.mubr.f32.gmra.mxu0 %v109_v38  ;;  %401 = vmatmul.mubr.f32.gmra.mxu1 %v109_v38  ;;  %v2906_v38 = vld [vmem:[#allocation11 + $0x30] sm:$0xff] }
  0x78   :  { %547 = vmatprep.subr.mxu0 %v2820_v39  ;;  %618 = vmatprep.subr.mxu1 %v2822_v40  ;;  %3852 = vst [vmem:[#allocation37_spill] sm:$0xff] %v2906_v38 }
  0x79   :  { %548 = vmatpush1.msra.mxu0 %v2826_v41  ;;  %619 = vmatpush1.msra.mxu1 %v2828_v42 }
  0x7a   :  { %549 = vmatprep.subr.mxu0 %v2830_v43  ;;  %620 = vmatprep.subr.mxu1 %v2832_v44 }
  0x7b   :  { %293 = vmatprep.mubr.f32.mxu0 %v3742_v0  ;;  %406 = vmatprep.mubr.f32.mxu1 %v3742_v0 }
  0x7c   :  { %550 = vmatpush1.msra.mxu0 %v2838_v45  ;;  %621 = vmatpush1.msra.mxu1 %v2840_v46 }
  0x7d   :  { %294 = vmatmul.mubr.f32.gmra.mxu0 %v110_v47  ;;  %407 = vmatmul.mubr.f32.gmra.mxu1 %v110_v47  ;;  %v2908_v47 = vld [vmem:[#allocation11 + $0x8] sm:$0xff] }
  0x7e   :  { %551 = vmatprep.subr.mxu0 %v2846_v48  ;;  %622 = vmatprep.subr.mxu1 %v2848_v49  ;;  %3853 = vst [vmem:[#allocation38_spill] sm:$0xff] %v2908_v47 }
  0x7f   :  { %552 = vmatpush1.msra.mxu0 %v2852_v50  ;;  %623 = vmatpush1.msra.mxu1 %v2854_v51 }
  0x80   :  { %553 = vmatprep.subr.mxu0 %v2856_v52  ;;  %624 = vmatprep.subr.mxu1 %v2858_v53 }
  0x81   :  { %299 = vmatprep.mubr.f32.mxu0 %v3742_v0  ;;  %412 = vmatprep.mubr.f32.mxu1 %v3742_v0 }
  0x82   :  { %554 = vmatpush1.msra.mxu0 %v2864_v54  ;;  %625 = vmatpush1.msra.mxu1 %v2866_v55 }
  0x83   :  { %300 = vmatmul.mubr.f32.gmra.mxu0 %v111_v56  ;;  %413 = vmatmul.mubr.f32.gmra.mxu1 %v111_v56  ;;  %v2910_v56 = vld [vmem:[#allocation11 + $0x18] sm:$0xff] }
  0x84   :  { %555 = vmatprep.subr.mxu0 %v2872_v57  ;;  %626 = vmatprep.subr.mxu1 %v2874_v58  ;;  %3854 = vst [vmem:[#allocation39_spill] sm:$0xff] %v2910_v56 }
  0x85   :  { %556 = vmatpush1.msra.mxu0 %v2878_v59  ;;  %627 = vmatpush1.msra.mxu1 %v2880_v60 }
  0x86   :  { %557 = vmatprep.subr.mxu0 %v2882_v61  ;;  %628 = vmatprep.subr.mxu1 %v2884_v62 }
  0x87   :  { %305 = vmatprep.mubr.f32.mxu0 %v3742_v0  ;;  %418 = vmatprep.mubr.f32.mxu1 %v3742_v0  ;;  %v2914_v0 = vld [vmem:[#allocation11] sm:$0xff] }
  0x88   :  { %558 = vmatpush1.msra.mxu0 %v2890_v63  ;;  %629 = vmatpush1.msra.mxu1 %v2892_v1  ;;  %3855 = vst [vmem:[#allocation40_spill] sm:$0xff] %v2914_v0  ;;  %v2918_v1 = vld [vmem:[#allocation11 + $0x10] sm:$0xff] }
  0x89   :  { %306 = vmatmul.mubr.f32.gmra.mxu0 %v112_v2  ;;  %419 = vmatmul.mubr.f32.gmra.mxu1 %v112_v2  ;;  %3856 = vst [vmem:[#allocation41_spill] sm:$0xff] %v2918_v1  ;;  %v3857_v2 = vmov 0.0  }
  0x8a   :  { %559 = vmatprep.subr.mxu0 %v2898_v11  ;;  %630 = vmatprep.subr.mxu1 %v2900_v20 }
  0x8b   :  { %560 = vmatpush1.msra.mxu0 %v2904_v29  ;;  %631 = vmatpush1.msra.mxu1 %v2906_v38 }
  0x8c   :  { %561 = vmatprep.subr.mxu0 %v2908_v47  ;;  %632 = vmatprep.subr.mxu1 %v2910_v56 }
  0x8d   :  { %562 = vmatpush1.msra.mxu0 %v2914_v0  ;;  %595 = vmatprep.mubr.f32.mxu0 %v3857_v2 }
  0x8e   :  { %633 = vmatpush1.msra.mxu1 %v2918_v1  ;;  %666 = vmatprep.mubr.f32.mxu1 %v3857_v2 }
  0x8f   :  { %596 = vmatmul.mubr.f32.vlgmr.msra.gmra.mxu0 %v3857_v2  ;;  %667 = vmatmul.mubr.f32.vlgmr.msra.gmra.mxu1 %v3857_v2 }
  0x90   :  { %709 = vmatprep.subr.mxu0 %v2718_v3  ;;  %780 = vmatprep.subr.mxu1 %v2720_v4 }
  0x91   :  { %710 = vmatpush1.msra.mxu0 %v2722_v5  ;;  %781 = vmatpush1.msra.mxu1 %v2724_v6 }
  0x92   :  { %711 = vmatprep.subr.mxu0 %v2726_v7  ;;  %782 = vmatprep.subr.mxu1 %v2728_v8 }
  0x93   :  { %712 = vmatpush1.msra.mxu0 %v2734_v9  ;;  %783 = vmatpush1.msra.mxu1 %v2736_v10 }
  0x94   :  { %713 = vmatprep.subr.mxu0 %v2742_v12  ;;  %784 = vmatprep.subr.mxu1 %v2744_v13 }
  0x95   :  { %714 = vmatpush1.msra.mxu0 %v2748_v14  ;;  %785 = vmatpush1.msra.mxu1 %v2750_v15 }
  0x96   :  { %715 = vmatprep.subr.mxu0 %v2752_v16  ;;  %786 = vmatprep.subr.mxu1 %v2754_v17 }
  0x97   :  { %716 = vmatpush1.msra.mxu0 %v2760_v18  ;;  %787 = vmatpush1.msra.mxu1 %v2762_v19 }
  0x98   :  { %717 = vmatprep.subr.mxu0 %v2768_v21  ;;  %788 = vmatprep.subr.mxu1 %v2770_v22 }
  0x99   :  { %718 = vmatpush1.msra.mxu0 %v2774_v23  ;;  %789 = vmatpush1.msra.mxu1 %v2776_v24 }
  0x9a   :  { %719 = vmatprep.subr.mxu0 %v2778_v25  ;;  %790 = vmatprep.subr.mxu1 %v2780_v26 }
  0x9b   :  { %720 = vmatpush1.msra.mxu0 %v2786_v27  ;;  %791 = vmatpush1.msra.mxu1 %v2788_v28 }
  0x9c   :  { %721 = vmatprep.subr.mxu0 %v2794_v30  ;;  %792 = vmatprep.subr.mxu1 %v2796_v31 }
  0x9d   :  { %722 = vmatpush1.msra.mxu0 %v2800_v32  ;;  %793 = vmatpush1.msra.mxu1 %v2802_v33 }
  0x9e   :  { %723 = vmatprep.subr.mxu0 %v2804_v34  ;;  %794 = vmatprep.subr.mxu1 %v2806_v35 }
  0x9f   :  { %724 = vmatpush1.msra.mxu0 %v2812_v36  ;;  %795 = vmatpush1.msra.mxu1 %v2814_v37 }
  0xa0   :  { %725 = vmatprep.subr.mxu0 %v2820_v39  ;;  %796 = vmatprep.subr.mxu1 %v2822_v40 }
  0xa1   :  { %726 = vmatpush1.msra.mxu0 %v2826_v41  ;;  %797 = vmatpush1.msra.mxu1 %v2828_v42 }
  0xa2   :  { %727 = vmatprep.subr.mxu0 %v2830_v43  ;;  %798 = vmatprep.subr.mxu1 %v2832_v44 }
  0xa3   :  { %728 = vmatpush1.msra.mxu0 %v2838_v45  ;;  %799 = vmatpush1.msra.mxu1 %v2840_v46 }
  0xa4   :  { %729 = vmatprep.subr.mxu0 %v2846_v48  ;;  %800 = vmatprep.subr.mxu1 %v2848_v49 }
  0xa5   :  { %730 = vmatpush1.msra.mxu0 %v2852_v50  ;;  %801 = vmatpush1.msra.mxu1 %v2854_v51 }
  0xa6   :  { %731 = vmatprep.subr.mxu0 %v2856_v52  ;;  %802 = vmatprep.subr.mxu1 %v2858_v53  ;;  %v3858_v52 = vld [vmem:[#allocation33_spill] sm:$0xff] }
  0xa7   :  { %732 = vmatpush1.msra.mxu0 %v2864_v54  ;;  %803 = vmatpush1.msra.mxu1 %v2866_v55 }
  0xa8   :  { %733 = vmatprep.subr.mxu0 %v2872_v57  ;;  %804 = vmatprep.subr.mxu1 %v2874_v58 }
  0xa9   :  { %734 = vmatpush1.msra.mxu0 %v2878_v59  ;;  %805 = vmatpush1.msra.mxu1 %v2880_v60 }
  0xaa   :  { %735 = vmatprep.subr.mxu0 %v2882_v61  ;;  %806 = vmatprep.subr.mxu1 %v2884_v62 }
  0xab   :  { %736 = vmatpush1.msra.mxu0 %v2890_v63  ;;  %807 = vmatpush1.msra.mxu1 %v3858_v52 }
  0xac   :  { %737 = vmatprep.subr.mxu0 %v2898_v11  ;;  %808 = vmatprep.subr.mxu1 %v2900_v20  ;;  %v179_v20 = vlaneseq }
  0xad   :  { %738 = vmatpush1.msra.mxu0 %v2904_v29  ;;  %809 = vmatpush1.msra.mxu1 %v2906_v38 }
  0xae   :  { %739 = vmatprep.subr.mxu0 %v2908_v47  ;;  %810 = vmatprep.subr.mxu1 %v2910_v56  ;;  %v180_v29 = vshrl.u32 %v179_v20, 7 }
  0xaf   :  { %740 = vmatpush1.msra.mxu0 %v2914_v0  ;;  %773 = vmatprep.mubr.f32.mxu0 %v3857_v2  ;;  %v177_v0 = vld [vmem:[%s3736_s3] sm:$0xf] }
  0xb0   :  { %811 = vmatpush1.msra.mxu1 %v2918_v1  ;;  %844 = vmatprep.mubr.f32.mxu1 %v3857_v2  ;;  %v181_v47 = vsub.s32 0, %v180_v29  ;;  %v189_v56 = vsub.s32 2, %v180_v29  ;;  %v185_v2 = vsub.s32 1, %v180_v29 }
  0xb1   :  { %887 = vmatprep.subr.mxu0 %v2718_v3  ;;  %958 = vmatprep.subr.mxu1 %v2720_v4  ;;  %v193_v3 = vsub.s32 3, %v180_v29 }
  0xb2   :  { %v182_v63 = vrot.slane %v177_v0, %v181_v47  ;;  %v3007_v4 = vrot.slane %v177_v0, %v189_v56  ;;  %v186_v61 = vrot.slane %v177_v0, %v185_v2 }
  0xb3   :  { %v3009_v60 = vrot.slane %v177_v0, %v193_v3 }
 0x11f   :  { %v2996_v11 = vpop.f32.mrf.mxu0  ;;  %v2998_v38 = vpop.f32.mrf.mxu1 }
 0x121   :  { %v3003_v52 = vpop.f32.mrf.mxu0  ;;  %v3005_v1 = vpop.f32.mrf.mxu1 }
 0x125   :  { %v271_v20 = vpop.f32.mrf.mxu0  ;;  %v384_v62 = vpop.f32.mrf.mxu1 }
 0x126   :  { %v3011_v59 = vadd.f32 %v271_v20, %v182_v63  ;;  %v3014_v58 = vadd.f32 %v384_v62, %v3007_v4 }
 0x127   :  { %v273_v57 = vpop.f32.mrf.mxu0  ;;  %v386_v55 = vpop.f32.mrf.mxu1 }
 0x128   :  { %3859 = vst [vmem:[#allocation42_spill] sm:$0xff] %v3011_v59  ;;  %3860 = vst [vmem:[#allocation43_spill] sm:$0xff] %v3014_v58  ;;  %v3016_v54 = vadd.f32 %v273_v57, %v186_v61  ;;  %v3019_v53 = vadd.f32 %v386_v55, %v3009_v60 }
 0x12a   :  { %3861 = vst [vmem:[#allocation44_spill] sm:$0xff] %v3016_v54  ;;  %3862 = vst [vmem:[#allocation45_spill] sm:$0xff] %v3019_v53 }
 0x12b   :  { %v277_v29 = vpop.f32.mrf.mxu0  ;;  %v390_v47 = vpop.f32.mrf.mxu1 }
 0x12c   :  { %v3021_v56 = vadd.f32 %v277_v29, %v182_v63  ;;  %v3024_v2 = vadd.f32 %v390_v47, %v3007_v4 }
 0x12d   :  { %v279_v0 = vpop.f32.mrf.mxu0  ;;  %v392_v3 = vpop.f32.mrf.mxu1 }
 0x12e   :  { %3863 = vst [vmem:[#allocation46_spill] sm:$0xff] %v3021_v56  ;;  %3864 = vst [vmem:[#allocation47_spill] sm:$0xff] %v3024_v2  ;;  %v3026_v20 = vadd.f32 %v279_v0, %v186_v61  ;;  %v3029_v62 = vadd.f32 %v392_v3, %v3009_v60 }
 0x130   :  { %3865 = vst [vmem:[#allocation48_spill] sm:$0xff] %v3026_v20  ;;  %3866 = vst [vmem:[#allocation49_spill] sm:$0xff] %v3029_v62 }
 0x131   :  { %v283_v58 = vpop.f32.mrf.mxu0  ;;  %v396_v57 = vpop.f32.mrf.mxu1 }
 0x132   :  { %v3031_v54 = vadd.f32 %v283_v58, %v182_v63  ;;  %v3034_v55 = vadd.f32 %v396_v57, %v3007_v4 }
 0x133   :  { %v285_v53 = vpop.f32.mrf.mxu0  ;;  %v398_v29 = vpop.f32.mrf.mxu1 }
 0x134   :  { %3867 = vst [vmem:[#allocation50_spill] sm:$0xff] %v3031_v54  ;;  %3868 = vst [vmem:[#allocation51_spill] sm:$0xff] %v3034_v55  ;;  %v3036_v56 = vadd.f32 %v285_v53, %v186_v61  ;;  %v3039_v47 = vadd.f32 %v398_v29, %v3009_v60 }
 0x136   :  { %3869 = vst [vmem:[#allocation52_spill] sm:$0xff] %v3036_v56  ;;  %3870 = vst [vmem:[#allocation53_spill] sm:$0xff] %v3039_v47 }
 0x137   :  { %v289_v2 = vpop.f32.mrf.mxu0  ;;  %v402_v0 = vpop.f32.mrf.mxu1 }
 0x138   :  { %v3041_v20 = vadd.f32 %v289_v2, %v182_v63  ;;  %v3044_v3 = vadd.f32 %v402_v0, %v3007_v4 }
 0x139   :  { %v291_v62 = vpop.f32.mrf.mxu0  ;;  %v404_v58 = vpop.f32.mrf.mxu1 }
 0x13a   :  { %3871 = vst [vmem:[#allocation54_spill] sm:$0xff] %v3041_v20  ;;  %3872 = vst [vmem:[#allocation55_spill] sm:$0xff] %v3044_v3  ;;  %v3046_v54 = vadd.f32 %v291_v62, %v186_v61  ;;  %v3049_v57 = vadd.f32 %v404_v58, %v3009_v60 }
 0x13c   :  { %3873 = vst [vmem:[#allocation56_spill] sm:$0xff] %v3046_v54  ;;  %3874 = vst [vmem:[#allocation57_spill] sm:$0xff] %v3049_v57 }
 0x13d   :  { %v295_v55 = vpop.f32.mrf.mxu0  ;;  %v408_v53 = vpop.f32.mrf.mxu1 }
 0x13e   :  { %v3051_v56 = vadd.f32 %v295_v55, %v182_v63  ;;  %v3054_v29 = vadd.f32 %v408_v53, %v3007_v4 }
 0x13f   :  { %v297_v47 = vpop.f32.mrf.mxu0  ;;  %v410_v2 = vpop.f32.mrf.mxu1 }
 0x140   :  { %3875 = vst [vmem:[#allocation58_spill] sm:$0xff] %v3051_v56  ;;  %3876 = vst [vmem:[#allocation59_spill] sm:$0xff] %v3054_v29  ;;  %v3056_v20 = vadd.f32 %v297_v47, %v186_v61  ;;  %v3059_v0 = vadd.f32 %v410_v2, %v3009_v60 }
 0x142   :  { %3877 = vst [vmem:[#allocation60_spill] sm:$0xff] %v3056_v20  ;;  %3878 = vst [vmem:[#allocation61_spill] sm:$0xff] %v3059_v0 }
 0x143   :  { %v301_v3 = vpop.f32.mrf.mxu0  ;;  %v414_v62 = vpop.f32.mrf.mxu1 }
 0x144   :  { %v3061_v54 = vadd.f32 %v301_v3, %v182_v63  ;;  %v3064_v58 = vadd.f32 %v414_v62, %v3007_v4 }
 0x145   :  { %v303_v57 = vpop.f32.mrf.mxu0  ;;  %v416_v55 = vpop.f32.mrf.mxu1 }
 0x146   :  { %3879 = vst [vmem:[#allocation62_spill] sm:$0xff] %v3061_v54  ;;  %3880 = vst [vmem:[#allocation63_spill] sm:$0xff] %v3064_v58  ;;  %v3066_v56 = vadd.f32 %v303_v57, %v186_v61  ;;  %v3069_v53 = vadd.f32 %v416_v55, %v3009_v60  ;;  %v266_v57 = vadd.f32 %v2996_v11, %v182_v63 }
 0x147   :  { %v268_v55 = vadd.f32 %v3003_v52, %v186_v61 }
 0x148   :  { %3881 = vst [vmem:[#allocation64_spill] sm:$0xff] %v3066_v56  ;;  %3882 = vst [vmem:[#allocation65_spill] sm:$0xff] %v3069_v53 }
 0x149   :  { %v307_v29 = vpop.f32.mrf.mxu0  ;;  %v420_v47 = vpop.f32.mrf.mxu1 }
 0x14a   :  { %v3071_v20 = vadd.f32 %v307_v29, %v182_v63  ;;  %v3074_v2 = vadd.f32 %v420_v47, %v3007_v4 }
 0x14b   :  { %v309_v0 = vpop.f32.mrf.mxu0  ;;  %v422_v3 = vpop.f32.mrf.mxu1 }
 0x14c   :  { %3883 = vst [vmem:[#allocation66_spill] sm:$0xff] %v3071_v20  ;;  %3884 = vst [vmem:[#allocation67_spill] sm:$0xff] %v3074_v2  ;;  %v3076_v54 = vadd.f32 %v309_v0, %v186_v61  ;;  %v3079_v62 = vadd.f32 %v422_v3, %v3009_v60  ;;  %v381_v0 = vadd.f32 %v3005_v1, %v3009_v60 }
 0x14d   :  { %v379_v3 = vadd.f32 %v2998_v38, %v3007_v4 }
 0x14e   :  { %3885 = vst [vmem:[#allocation68_spill] sm:$0xff] %v3076_v54  ;;  %3886 = vst [vmem:[#allocation69_spill] sm:$0xff] %v3079_v62 }
 0x14f   :  { %v597_v58 = vpop.f32.mrf.mxu0  ;;  %v668_v20 = vpop.f32.mrf.mxu1 }
 0x150   :  { %v673_v53 = vadd.f32 %v597_v58, %v266_v57  ;;  %v675_v62 = vadd.f32 %v668_v20, %v379_v3  ;;  %v3888_v20 = vld [vmem:[#allocation22_spill] sm:$0xff]  ;;  %v3893_v3 = vld [vmem:[#allocation27_spill] sm:$0xff] }
 0x151   :  { %v599_v56 = vpop.f32.mrf.mxu0  ;;  %v670_v2 = vpop.f32.mrf.mxu1 }
 0x152   :  { %v2167_v59 = vmul.f32 -1.442695, %v673_v53  ;;  %v674_v29 = vadd.f32 %v599_v56, %v268_v55  ;;  %v676_v54 = vadd.f32 %v670_v2, %v381_v0  ;;  %v3892_v0 = vld [vmem:[#allocation26_spill] sm:$0xff] }
 0x154   :  { %2309 = vpow2.f32 %v2167_v59  ;;  %v2168_v47 = vmul.f32 -1.442695, %v674_v29  ;;  %v2169_v63 = vmul.f32 -1.442695, %v676_v54  ;;  %v3890_v29 = vld [vmem:[#allocation24_spill] sm:$0xff] }
 0x156   :  { %2311 = vpow2.f32 %v2168_v47  ;;  %v3891_v47 = vld [vmem:[#allocation25_spill] sm:$0xff] }
 0x157   :  { %2313 = vpow2.f32 %v2169_v63  ;;  %v3894_v63 = vld [vmem:[#allocation28_spill] sm:$0xff] }
 0x161   :  { %v2310_v11 = vpop.eup %2309 }
 0x162   :  { %v680_v52 = vadd.f32 1.0, %v2310_v11  ;;  %v3895_v11 = vld [vmem:[#allocation29_spill] sm:$0xff] }
 0x163   :  { %v2312_v61 = vpop.eup %2311 }
 0x164   :  { %2315 = vrcp.f32 %v680_v52  ;;  %v686_v56 = vadd.f32 1.0, %v2312_v61  ;;  %v2314_v59 = vpop.eup %2313  ;;  %v3896_v52 = vld [vmem:[#allocation30_spill] sm:$0xff]  ;;  %v3897_v61 = vld [vmem:[#allocation31_spill] sm:$0xff] }
 0x165   :  { %2317 = vtanh.f32 %v675_v62  ;;  %v693_v55 = vadd.f32 1.0, %v2314_v59  ;;  %v3889_v62 = vld [vmem:[#allocation23_spill] sm:$0xff]  ;;  %v3899_v59 = vld [vmem:[#allocation33_spill] sm:$0xff] }
 0x166   :  { %2319 = vrcp.f32 %v686_v56  ;;  %v3898_v56 = vld [vmem:[#allocation32_spill] sm:$0xff] }
 0x167   :  { %2321 = vrcp.f32 %v693_v55  ;;  %v3903_v55 = vld [vmem:[#allocation37_spill] sm:$0xff] }
 0x171   :  { %v2316_v58 = vpop.eup %2315 }
 0x172   :  { %v2318_v53 = vpop.eup %2317  ;;  %v696_v60 = vmul.f32 0.0, %v2316_v58  ;;  %v3900_v58 = vld [vmem:[#allocation34_spill] sm:$0xff] }
 0x173   :  { %v2320_v57 = vpop.eup %2319 }
 0x174   :  { %v697_v1 = vmul.f32 %v2320_v57, %v2318_v53  ;;  %v2322_v4 = vpop.eup %2321  ;;  %v3901_v53 = vld [vmem:[#allocation35_spill] sm:$0xff]  ;;  %v3902_v57 = vld [vmem:[#allocation36_spill] sm:$0xff] }
 0x176   :  { %v3087_v2 = vadd.f32 %v697_v1, %v696_v60  ;;  %v3904_v60 = vld [vmem:[#allocation38_spill] sm:$0xff]  ;;  %v3905_v1 = vld [vmem:[#allocation39_spill] sm:$0xff] }
 0x178   :  { %2323 = vtanh.f32 %v3087_v2 }
 0x185   :  { %v2324_v54 = vpop.eup %2323 }
 0x186   :  { %v3090_v38 = vmul.f32 %v2324_v54, %v2322_v4  ;;  %v3906_v4 = vld [vmem:[#allocation40_spill] sm:$0xff]  ;;  %v3907_v54 = vmov 0.0  }
 0x188   :  { %3887 = vst [vmem:[#allocation70_spill] sm:$0xff] %v3090_v38  ;;  %774 = vmatmul.mubr.f32.vlgmr.msra.gmra.mxu0 %v3090_v38  ;;  %845 = vmatmul.mubr.f32.vlgmr.msra.gmra.mxu1 %v3090_v38  ;;  %v3908_v38 = vld [vmem:[#allocation41_spill] sm:$0xff] }
 0x189   :  { %888 = vmatpush1.msra.mxu0 %v2722_v5  ;;  %959 = vmatpush1.msra.mxu1 %v2724_v6 }
 0x18a   :  { %889 = vmatprep.subr.mxu0 %v2726_v7  ;;  %960 = vmatprep.subr.mxu1 %v2728_v8 }
 0x18b   :  { %890 = vmatpush1.msra.mxu0 %v2734_v9  ;;  %961 = vmatpush1.msra.mxu1 %v2736_v10 }
 0x18c   :  { %891 = vmatprep.subr.mxu0 %v2742_v12  ;;  %962 = vmatprep.subr.mxu1 %v2744_v13 }
 0x18d   :  { %892 = vmatpush1.msra.mxu0 %v2748_v14  ;;  %963 = vmatpush1.msra.mxu1 %v2750_v15 }
 0x18e   :  { %893 = vmatprep.subr.mxu0 %v2752_v16  ;;  %964 = vmatprep.subr.mxu1 %v2754_v17 }
 0x18f   :  { %894 = vmatpush1.msra.mxu0 %v2760_v18  ;;  %965 = vmatpush1.msra.mxu1 %v2762_v19 }
 0x190   :  { %895 = vmatprep.subr.mxu0 %v2768_v21  ;;  %966 = vmatprep.subr.mxu1 %v2770_v22 }
 0x191   :  { %896 = vmatpush1.msra.mxu0 %v2774_v23  ;;  %967 = vmatpush1.msra.mxu1 %v2776_v24 }
 0x192   :  { %897 = vmatprep.subr.mxu0 %v2778_v25  ;;  %968 = vmatprep.subr.mxu1 %v2780_v26 }
 0x193   :  { %898 = vmatpush1.msra.mxu0 %v2786_v27  ;;  %969 = vmatpush1.msra.mxu1 %v2788_v28 }
 0x194   :  { %899 = vmatprep.subr.mxu0 %v2794_v30  ;;  %970 = vmatprep.subr.mxu1 %v2796_v31 }
 0x195   :  { %900 = vmatpush1.msra.mxu0 %v2800_v32  ;;  %971 = vmatpush1.msra.mxu1 %v2802_v33 }
 0x196   :  { %901 = vmatprep.subr.mxu0 %v2804_v34  ;;  %972 = vmatprep.subr.mxu1 %v2806_v35 }
 0x197   :  { %902 = vmatpush1.msra.mxu0 %v2812_v36  ;;  %973 = vmatpush1.msra.mxu1 %v2814_v37 }
 0x198   :  { %903 = vmatprep.subr.mxu0 %v2820_v39  ;;  %974 = vmatprep.subr.mxu1 %v2822_v40 }
 0x199   :  { %904 = vmatpush1.msra.mxu0 %v2826_v41  ;;  %975 = vmatpush1.msra.mxu1 %v2828_v42 }
 0x19a   :  { %905 = vmatprep.subr.mxu0 %v2830_v43  ;;  %976 = vmatprep.subr.mxu1 %v2832_v44 }
 0x19b   :  { %906 = vmatpush1.msra.mxu0 %v2838_v45  ;;  %977 = vmatpush1.msra.mxu1 %v2840_v46 }
 0x19c   :  { %907 = vmatprep.subr.mxu0 %v2846_v48  ;;  %978 = vmatprep.subr.mxu1 %v2848_v49 }
 0x19d   :  { %908 = vmatpush1.msra.mxu0 %v2852_v50  ;;  %979 = vmatpush1.msra.mxu1 %v2854_v51 }
 0x19e   :  { %909 = vmatprep.subr.mxu0 %v3888_v20  ;;  %980 = vmatprep.subr.mxu1 %v3889_v62 }
 0x19f   :  { %910 = vmatpush1.msra.mxu0 %v3890_v29  ;;  %981 = vmatpush1.msra.mxu1 %v3891_v47 }
 0x1a0   :  { %911 = vmatprep.subr.mxu0 %v3892_v0  ;;  %982 = vmatprep.subr.mxu1 %v3893_v3  ;;  %v3914_v0 = vld [vmem:[#allocation43_spill] sm:$0xff] }
 0x1a1   :  { %912 = vmatpush1.msra.mxu0 %v3894_v63  ;;  %983 = vmatpush1.msra.mxu1 %v3895_v11  ;;  %v3913_v63 = vld [vmem:[#allocation45_spill] sm:$0xff] }
 0x1a2   :  { %913 = vmatprep.subr.mxu0 %v3896_v52  ;;  %984 = vmatprep.subr.mxu1 %v3897_v61 }
 0x1a3   :  { %914 = vmatpush1.msra.mxu0 %v3898_v56  ;;  %985 = vmatpush1.msra.mxu1 %v3899_v59  ;;  %v3909_v59 = vld [vmem:[#allocation20_spill] sm:$0xff] }
 0x1a4   :  { %915 = vmatprep.subr.mxu0 %v3900_v58  ;;  %986 = vmatprep.subr.mxu1 %v3901_v53  ;;  %v3910_v58 = vld [vmem:[#allocation21_spill] sm:$0xff] }
 0x1a5   :  { %916 = vmatpush1.msra.mxu0 %v3902_v57  ;;  %987 = vmatpush1.msra.mxu1 %v3903_v55  ;;  %v3911_v57 = vld [vmem:[#allocation42_spill] sm:$0xff] }
 0x1a6   :  { %917 = vmatprep.subr.mxu0 %v3904_v60  ;;  %988 = vmatprep.subr.mxu1 %v3905_v1  ;;  %v3912_v60 = vld [vmem:[#allocation44_spill] sm:$0xff] }
 0x1a7   :  { %918 = vmatpush1.msra.mxu0 %v3906_v4  ;;  %951 = vmatprep.mubr.f32.mxu0 %v3907_v54 }
 0x1a8   :  { %989 = vmatpush1.msra.mxu1 %v3908_v38  ;;  %1022 = vmatprep.mubr.f32.mxu1 %v3907_v54 }
 0x1a9   :  { %1065 = vmatprep.subr.mxu0 %v3909_v59  ;;  %1136 = vmatprep.subr.mxu1 %v3910_v58 }
 0x248   :  { %v775_v53 = vpop.f32.mrf.mxu0  ;;  %v846_v1 = vpop.f32.mrf.mxu1 }
 0x249   :  { %v851_v56 = vadd.f32 %v775_v53, %v3911_v57  ;;  %v853_v59 = vadd.f32 %v846_v1, %v3914_v0 }
 0x24a   :  { %v777_v55 = vpop.f32.mrf.mxu0  ;;  %v848_v11 = vpop.f32.mrf.mxu1 }
 0x24b   :  { %v2170_v61 = vmul.f32 -1.442695, %v851_v56  ;;  %v852_v52 = vadd.f32 %v777_v55, %v3912_v60  ;;  %v854_v38 = vadd.f32 %v848_v11, %v3913_v63 }
 0x24d   :  { %2325 = vpow2.f32 %v2170_v61  ;;  %v2171_v4 = vmul.f32 -1.442695, %v852_v52  ;;  %v2172_v3 = vmul.f32 -1.442695, %v854_v38 }
 0x24f   :  { %2327 = vpow2.f32 %v2171_v4 }
 0x250   :  { %2329 = vpow2.f32 %v2172_v3 }
 0x25a   :  { %v2326_v54 = vpop.eup %2325 }
 0x25b   :  { %v858_v47 = vadd.f32 1.0, %v2326_v54  ;;  %v3937_v54 = vld [vmem:[#allocation49_spill] sm:$0xff] }
 0x25c   :  { %v2328_v58 = vpop.eup %2327 }
 0x25d   :  { %2331 = vrcp.f32 %v858_v47  ;;  %v864_v53 = vadd.f32 1.0, %v2328_v58  ;;  %v2330_v56 = vpop.eup %2329 }
 0x25e   :  { %2333 = vtanh.f32 %v853_v59  ;;  %v871_v52 = vadd.f32 1.0, %v2330_v56  ;;  %v3938_v56 = vld [vmem:[#allocation47_spill] sm:$0xff] }
 0x25f   :  { %2335 = vrcp.f32 %v864_v53 }
 0x260   :  { %2337 = vrcp.f32 %v871_v52 }
 0x26a   :  { %v2332_v57 = vpop.eup %2331 }
 0x26b   :  { %v2334_v61 = vpop.eup %2333  ;;  %v874_v60 = vmul.f32 %v2332_v57, %v3087_v2 }
 0x26c   :  { %v2336_v55 = vpop.eup %2335 }
 0x26d   :  { %v875_v4 = vmul.f32 %v2336_v55, %v2334_v61  ;;  %v2338_v38 = vpop.eup %2337 }
 0x26f   :  { %v3165_v63 = vadd.f32 %v875_v4, %v874_v60 }
 0x271   :  { %2339 = vtanh.f32 %v3165_v63 }
 0x27e   :  { %v2340_v0 = vpop.eup %2339 }
 0x27f   :  { %v3168_v3 = vmul.f32 %v2340_v0, %v2338_v38 }
 0x281   :  { %952 = vmatmul.mubr.f32.vlgmr.msra.gmra.mxu0 %v3168_v3  ;;  %1023 = vmatmul.mubr.f32.vlgmr.msra.gmra.mxu1 %v3168_v3 }
 0x282   :  { %1066 = vmatpush1.msra.mxu0 %v2722_v5  ;;  %1137 = vmatpush1.msra.mxu1 %v2724_v6  ;;  %v3915_v5 = vld [vmem:[#allocation25_spill] sm:$0xff]  ;;  %v3916_v6 = vld [vmem:[#allocation26_spill] sm:$0xff] }
 0x283   :  { %1067 = vmatprep.subr.mxu0 %v2726_v7  ;;  %1138 = vmatprep.subr.mxu1 %v2728_v8  ;;  %v3917_v7 = vld [vmem:[#allocation27_spill] sm:$0xff]  ;;  %v3918_v8 = vld [vmem:[#allocation28_spill] sm:$0xff] }
 0x284   :  { %1068 = vmatpush1.msra.mxu0 %v2734_v9  ;;  %1139 = vmatpush1.msra.mxu1 %v2736_v10  ;;  %v3919_v9 = vld [vmem:[#allocation29_spill] sm:$0xff]  ;;  %v3920_v10 = vld [vmem:[#allocation30_spill] sm:$0xff] }
 0x285   :  { %1069 = vmatprep.subr.mxu0 %v2742_v12  ;;  %1140 = vmatprep.subr.mxu1 %v2744_v13  ;;  %v3921_v12 = vld [vmem:[#allocation31_spill] sm:$0xff]  ;;  %v3922_v13 = vld [vmem:[#allocation32_spill] sm:$0xff] }
 0x286   :  { %1070 = vmatpush1.msra.mxu0 %v2748_v14  ;;  %1141 = vmatpush1.msra.mxu1 %v2750_v15  ;;  %v3923_v14 = vld [vmem:[#allocation33_spill] sm:$0xff]  ;;  %v3924_v15 = vld [vmem:[#allocation34_spill] sm:$0xff] }
 0x287   :  { %1071 = vmatprep.subr.mxu0 %v2752_v16  ;;  %1142 = vmatprep.subr.mxu1 %v2754_v17  ;;  %v3925_v16 = vld [vmem:[#allocation35_spill] sm:$0xff]  ;;  %v3926_v17 = vld [vmem:[#allocation36_spill] sm:$0xff] }
 0x288   :  { %1072 = vmatpush1.msra.mxu0 %v2760_v18  ;;  %1143 = vmatpush1.msra.mxu1 %v2762_v19  ;;  %v3927_v18 = vld [vmem:[#allocation37_spill] sm:$0xff]  ;;  %v3928_v19 = vld [vmem:[#allocation38_spill] sm:$0xff] }
 0x289   :  { %1073 = vmatprep.subr.mxu0 %v2768_v21  ;;  %1144 = vmatprep.subr.mxu1 %v2770_v22  ;;  %v3929_v21 = vld [vmem:[#allocation39_spill] sm:$0xff]  ;;  %v3930_v22 = vld [vmem:[#allocation40_spill] sm:$0xff] }
 0x28a   :  { %1074 = vmatpush1.msra.mxu0 %v2774_v23  ;;  %1145 = vmatpush1.msra.mxu1 %v2776_v24  ;;  %v3931_v23 = vmov 0.0   ;;  %v3932_v24 = vld [vmem:[#allocation41_spill] sm:$0xff] }
 0x28b   :  { %1075 = vmatprep.subr.mxu0 %v2778_v25  ;;  %1146 = vmatprep.subr.mxu1 %v2780_v26  ;;  %v3236_v25 = vld [vmem:[#allocation11 + $0x1e8] sm:$0xff]  ;;  %v3239_v26 = vld [vmem:[#allocation11 + $0x1f8] sm:$0xff] }
 0x28c   :  { %1076 = vmatpush1.msra.mxu0 %v2786_v27  ;;  %1147 = vmatpush1.msra.mxu1 %v2788_v28  ;;  %3933 = vst [vmem:[#allocation22_spill] sm:$0xff] %v3236_v25  ;;  %3934 = vst [vmem:[#allocation23_spill] sm:$0xff] %v3239_v26  ;;  %v3935_v28 = vld [vmem:[#allocation46_spill] sm:$0xff] }
 0x28d   :  { %1077 = vmatprep.subr.mxu0 %v2794_v30  ;;  %1148 = vmatprep.subr.mxu1 %v2796_v31 }
 0x28e   :  { %1078 = vmatpush1.msra.mxu0 %v2800_v32  ;;  %1149 = vmatpush1.msra.mxu1 %v2802_v33  ;;  %v3936_v33 = vld [vmem:[#allocation48_spill] sm:$0xff] }
 0x28f   :  { %1079 = vmatprep.subr.mxu0 %v2804_v34  ;;  %1150 = vmatprep.subr.mxu1 %v2806_v35 }
 0x290   :  { %1080 = vmatpush1.msra.mxu0 %v2812_v36  ;;  %1151 = vmatpush1.msra.mxu1 %v2814_v37 }
 0x291   :  { %1081 = vmatprep.subr.mxu0 %v2820_v39  ;;  %1152 = vmatprep.subr.mxu1 %v2822_v40 }
 0x292   :  { %1082 = vmatpush1.msra.mxu0 %v2826_v41  ;;  %1153 = vmatpush1.msra.mxu1 %v2828_v42 }
 0x293   :  { %1083 = vmatprep.subr.mxu0 %v2830_v43  ;;  %1154 = vmatprep.subr.mxu1 %v2832_v44 }
 0x294   :  { %1084 = vmatpush1.msra.mxu0 %v2838_v45  ;;  %1155 = vmatpush1.msra.mxu1 %v2840_v46 }
 0x295   :  { %1085 = vmatprep.subr.mxu0 %v2846_v48  ;;  %1156 = vmatprep.subr.mxu1 %v2848_v49 }
 0x296   :  { %1086 = vmatpush1.msra.mxu0 %v2852_v50  ;;  %1157 = vmatpush1.msra.mxu1 %v2854_v51 }
 0x297   :  { %1087 = vmatprep.subr.mxu0 %v3888_v20  ;;  %1158 = vmatprep.subr.mxu1 %v3889_v62 }
 0x298   :  { %1088 = vmatpush1.msra.mxu0 %v3890_v29  ;;  %1159 = vmatpush1.msra.mxu1 %v3915_v5 }
 0x299   :  { %1089 = vmatprep.subr.mxu0 %v3916_v6  ;;  %1160 = vmatprep.subr.mxu1 %v3917_v7 }
 0x29a   :  { %1090 = vmatpush1.msra.mxu0 %v3918_v8  ;;  %1161 = vmatpush1.msra.mxu1 %v3919_v9 }
 0x29b   :  { %1091 = vmatprep.subr.mxu0 %v3920_v10  ;;  %1162 = vmatprep.subr.mxu1 %v3921_v12 }
 0x29c   :  { %1092 = vmatpush1.msra.mxu0 %v3922_v13  ;;  %1163 = vmatpush1.msra.mxu1 %v3923_v14 }
 0x29d   :  { %1093 = vmatprep.subr.mxu0 %v3924_v15  ;;  %1164 = vmatprep.subr.mxu1 %v3925_v16 }
 0x29e   :  { %1094 = vmatpush1.msra.mxu0 %v3926_v17  ;;  %1165 = vmatpush1.msra.mxu1 %v3927_v18 }
 0x29f   :  { %1095 = vmatprep.subr.mxu0 %v3928_v19  ;;  %1166 = vmatprep.subr.mxu1 %v3929_v21 }
 0x2a0   :  { %1096 = vmatpush1.msra.mxu0 %v3930_v22  ;;  %1129 = vmatprep.mubr.f32.mxu0 %v3931_v23 }
 0x2a1   :  { %1167 = vmatpush1.msra.mxu1 %v3932_v24  ;;  %1200 = vmatprep.mubr.f32.mxu1 %v3931_v23 }
 0x2a2   :  { %1243 = vmatprep.subr.mxu0 %v3236_v25  ;;  %1314 = vmatprep.subr.mxu1 %v3239_v26 }
 0x341   :  { %v953_v27 = vpop.f32.mrf.mxu0  ;;  %v1024_v47 = vpop.f32.mrf.mxu1 }
 0x342   :  { %v1029_v30 = vadd.f32 %v953_v27, %v3935_v28  ;;  %v1031_v57 = vadd.f32 %v1024_v47, %v3938_v56  ;;  %v3272_v56 = vld [vmem:[#allocation11 + $0x1a8] sm:$0xff] }
 0x343   :  { %v955_v31 = vpop.f32.mrf.mxu0  ;;  %v1026_v1 = vpop.f32.mrf.mxu1 }
 0x344   :  { %v2173_v32 = vmul.f32 -1.442695, %v1029_v30  ;;  %v1030_v2 = vadd.f32 %v955_v31, %v3936_v33  ;;  %v1032_v59 = vadd.f32 %v1026_v1, %v3937_v54  ;;  %v3254_v54 = vld [vmem:[#allocation11 + $0x1e0] sm:$0xff] }
 0x346   :  { %2341 = vpow2.f32 %v2173_v32  ;;  %v2174_v11 = vmul.f32 -1.442695, %v1030_v2  ;;  %v2175_v58 = vmul.f32 -1.442695, %v1032_v59  ;;  %v3939_v2 = vld [vmem:[#allocation70_spill] sm:$0xff]  ;;  %v3260_v59 = vld [vmem:[#allocation11 + $0x1c8] sm:$0xff] }
 0x347   :  { %v879_v47 = vadd.f32 %v3168_v3, %v3939_v2  ;;  %v3266_v3 = vld [vmem:[#allocation11 + $0x1c0] sm:$0xff] }
 0x348   :  { %2343 = vpow2.f32 %v2174_v11  ;;  %v3314_v2 = vld [vmem:[#allocation11 + $0x140] sm:$0xff] }
 0x349   :  { %2345 = vpow2.f32 %v2175_v58  ;;  %v3263_v58 = vld [vmem:[#allocation11 + $0x1d8] sm:$0xff] }
 0x353   :  { %v2342_v53 = vpop.eup %2341 }
 0x354   :  { %v1036_v61 = vadd.f32 1.0, %v2342_v53  ;;  %v3269_v53 = vld [vmem:[#allocation11 + $0x1d0] sm:$0xff] }
 0x355   :  { %v2344_v55 = vpop.eup %2343 }
 0x356   :  { %2347 = vrcp.f32 %v1036_v61  ;;  %v1042_v52 = vadd.f32 1.0, %v2344_v55  ;;  %v2346_v60 = vpop.eup %2345  ;;  %v3278_v61 = vld [vmem:[#allocation11 + $0x1a0] sm:$0xff]  ;;  %v3281_v55 = vld [vmem:[#allocation11 + $0x1b0] sm:$0xff] }
 0x357   :  { %2349 = vtanh.f32 %v1031_v57  ;;  %v1049_v27 = vadd.f32 1.0, %v2346_v60  ;;  %v3275_v57 = vld [vmem:[#allocation11 + $0x1b8] sm:$0xff] }
 0x358   :  { %2351 = vrcp.f32 %v1042_v52  ;;  %v3284_v52 = vld [vmem:[#allocation11 + $0x188] sm:$0xff]  ;;  %v3287_v60 = vld [vmem:[#allocation11 + $0x198] sm:$0xff] }
 0x359   :  { %2353 = vrcp.f32 %v1049_v27  ;;  %v3299_v27 = vld [vmem:[#allocation11 + $0x178] sm:$0xff] }
 0x363   :  { %v2348_v4 = vpop.eup %2347 }
 0x364   :  { %v2350_v38 = vpop.eup %2349  ;;  %v1052_v28 = vmul.f32 %v2348_v4, %v3165_v63  ;;  %v3257_v63 = vld [vmem:[#allocation11 + $0x1f0] sm:$0xff]  ;;  %v3290_v4 = vld [vmem:[#allocation11 + $0x180] sm:$0xff] }
 0x365   :  { %v2352_v0 = vpop.eup %2351 }
 0x366   :  { %v1053_v30 = vmul.f32 %v2352_v0, %v2350_v38  ;;  %v2354_v32 = vpop.eup %2353  ;;  %v3293_v38 = vld [vmem:[#allocation11 + $0x190] sm:$0xff]  ;;  %v3296_v0 = vld [vmem:[#allocation11 + $0x168] sm:$0xff] }
 0x368   :  { %v3247_v31 = vadd.f32 %v1053_v30, %v1052_v28  ;;  %v3302_v28 = vld [vmem:[#allocation11 + $0x160] sm:$0xff]  ;;  %v3305_v30 = vld [vmem:[#allocation11 + $0x170] sm:$0xff] }
 0x369   :  { %3940 = vst [vmem:[#allocation24_spill] sm:$0xff] %v3305_v30 }
 0x36a   :  { %2355 = vtanh.f32 %v3247_v31 }
 0x377   :  { %v2356_v33 = vpop.eup %2355 }
 0x378   :  { %v1056_v11 = vmul.f32 %v2356_v33, %v2354_v32  ;;  %v3308_v32 = vld [vmem:[#allocation11 + $0x148] sm:$0xff]  ;;  %v3311_v33 = vld [vmem:[#allocation11 + $0x158] sm:$0xff] }
 0x379   :  { %3941 = vst [vmem:[#allocation20_spill] sm:$0xff] %v3308_v32  ;;  %3942 = vst [vmem:[#allocation21_spill] sm:$0xff] %v3311_v33 }
 0x37a   :  { %v3252_v1 = vadd.f32 %v1056_v11, %v879_v47  ;;  %1130 = vmatmul.mubr.f32.vlgmr.msra.gmra.mxu0 %v1056_v11  ;;  %1201 = vmatmul.mubr.f32.vlgmr.msra.gmra.mxu1 %v1056_v11  ;;  %v3317_v47 = vld [vmem:[#allocation11 + $0x150] sm:$0xff]  ;;  %v3320_v11 = vld [vmem:[#allocation11 + $0x128] sm:$0xff] }
 0x37b   :  { %1244 = vmatpush1.msra.mxu0 %v3254_v54  ;;  %1315 = vmatpush1.msra.mxu1 %v3257_v63 }
 0x37c   :  { %1245 = vmatprep.subr.mxu0 %v3260_v59  ;;  %1316 = vmatprep.subr.mxu1 %v3263_v58 }
 0x37d   :  { %1246 = vmatpush1.msra.mxu0 %v3266_v3  ;;  %1317 = vmatpush1.msra.mxu1 %v3269_v53 }
 0x37e   :  { %1247 = vmatprep.subr.mxu0 %v3272_v56  ;;  %1318 = vmatprep.subr.mxu1 %v3275_v57 }
 0x37f   :  { %1248 = vmatpush1.msra.mxu0 %v3278_v61  ;;  %1319 = vmatpush1.msra.mxu1 %v3281_v55 }
 0x380   :  { %1249 = vmatprep.subr.mxu0 %v3284_v52  ;;  %1320 = vmatprep.subr.mxu1 %v3287_v60 }
 0x381   :  { %1250 = vmatpush1.msra.mxu0 %v3290_v4  ;;  %1321 = vmatpush1.msra.mxu1 %v3293_v38 }
 0x382   :  { %1251 = vmatprep.subr.mxu0 %v3296_v0  ;;  %1322 = vmatprep.subr.mxu1 %v3299_v27 }
 0x383   :  { %1252 = vmatpush1.msra.mxu0 %v3302_v28  ;;  %1323 = vmatpush1.msra.mxu1 %v3305_v30  ;;  %v3323_v30 = vld [vmem:[#allocation11 + $0x138] sm:$0xff] }
 0x384   :  { %1253 = vmatprep.subr.mxu0 %v3308_v32  ;;  %1324 = vmatprep.subr.mxu1 %v3311_v33  ;;  %v3326_v32 = vld [vmem:[#allocation11 + $0x120] sm:$0xff]  ;;  %v3329_v33 = vld [vmem:[#allocation11 + $0x130] sm:$0xff] }
 0x385   :  { %1254 = vmatpush1.msra.mxu0 %v3314_v2  ;;  %1325 = vmatpush1.msra.mxu1 %v3317_v47 }
 0x386   :  { %1255 = vmatprep.subr.mxu0 %v3320_v11  ;;  %1326 = vmatprep.subr.mxu1 %v3323_v30 }
 0x387   :  { %1256 = vmatpush1.msra.mxu0 %v3326_v32  ;;  %1327 = vmatpush1.msra.mxu1 %v3329_v33 }
 0x388   :  { %1257 = vmatprep.subr.mxu0 %v2804_v34  ;;  %1328 = vmatprep.subr.mxu1 %v2806_v35  ;;  %v3943_v35 = vld [vmem:[#allocation50_spill] sm:$0xff] }
 0x389   :  { %1258 = vmatpush1.msra.mxu0 %v2812_v36  ;;  %1329 = vmatpush1.msra.mxu1 %v2814_v37 }
 0x38a   :  { %1259 = vmatprep.subr.mxu0 %v2820_v39  ;;  %1330 = vmatprep.subr.mxu1 %v2822_v40  ;;  %v3944_v40 = vld [vmem:[#allocation52_spill] sm:$0xff] }
 0x38b   :  { %1260 = vmatpush1.msra.mxu0 %v2826_v41  ;;  %1331 = vmatpush1.msra.mxu1 %v2828_v42 }
 0x38c   :  { %1261 = vmatprep.subr.mxu0 %v2830_v43  ;;  %1332 = vmatprep.subr.mxu1 %v2832_v44 }
 0x38d   :  { %1262 = vmatpush1.msra.mxu0 %v2838_v45  ;;  %1333 = vmatpush1.msra.mxu1 %v2840_v46  ;;  %v3945_v45 = vld [vmem:[#allocation53_spill] sm:$0xff] }
 0x38e   :  { %1263 = vmatprep.subr.mxu0 %v2846_v48  ;;  %1334 = vmatprep.subr.mxu1 %v2848_v49 }
 0x38f   :  { %1264 = vmatpush1.msra.mxu0 %v2852_v50  ;;  %1335 = vmatpush1.msra.mxu1 %v2854_v51  ;;  %v3946_v50 = vld [vmem:[#allocation51_spill] sm:$0xff] }
 0x390   :  { %1265 = vmatprep.subr.mxu0 %v3888_v20  ;;  %1336 = vmatprep.subr.mxu1 %v3889_v62 }
 0x391   :  { %1266 = vmatpush1.msra.mxu0 %v3890_v29  ;;  %1337 = vmatpush1.msra.mxu1 %v3915_v5 }
 0x392   :  { %1267 = vmatprep.subr.mxu0 %v3916_v6  ;;  %1338 = vmatprep.subr.mxu1 %v3917_v7 }
 0x393   :  { %1268 = vmatpush1.msra.mxu0 %v3918_v8  ;;  %1339 = vmatpush1.msra.mxu1 %v3919_v9 }
 0x394   :  { %1269 = vmatprep.subr.mxu0 %v3920_v10  ;;  %1340 = vmatprep.subr.mxu1 %v3921_v12 }
 0x395   :  { %1270 = vmatpush1.msra.mxu0 %v3922_v13  ;;  %1341 = vmatpush1.msra.mxu1 %v3923_v14 }
 0x396   :  { %1271 = vmatprep.subr.mxu0 %v3924_v15  ;;  %1342 = vmatprep.subr.mxu1 %v3925_v16 }
 0x397   :  { %1272 = vmatpush1.msra.mxu0 %v3926_v17  ;;  %1343 = vmatpush1.msra.mxu1 %v3927_v18  ;;  %v3947_v18 = vld [vmem:[#allocation24_spill] sm:$0xff] }
 0x398   :  { %1273 = vmatprep.subr.mxu0 %v3928_v19  ;;  %1344 = vmatprep.subr.mxu1 %v3929_v21  ;;  %v3948_v19 = vld [vmem:[#allocation20_spill] sm:$0xff]  ;;  %v3949_v21 = vld [vmem:[#allocation21_spill] sm:$0xff] }
 0x399   :  { %1274 = vmatpush1.msra.mxu0 %v3930_v22  ;;  %1307 = vmatprep.mubr.f32.mxu0 %v3931_v23  ;;  %v3409_v22 = vld [vmem:[#allocation11 + $0x108] sm:$0xff] }
 0x39a   :  { %1345 = vmatpush1.msra.mxu1 %v3932_v24  ;;  %1378 = vmatprep.mubr.f32.mxu1 %v3931_v23  ;;  %v3412_v24 = vld [vmem:[#allocation11 + $0x118] sm:$0xff] }
 0x39b   :  { %1421 = vmatprep.subr.mxu0 %v3236_v25  ;;  %1492 = vmatprep.subr.mxu1 %v3239_v26 }
 0x43a   :  { %v1131_v34 = vpop.f32.mrf.mxu0  ;;  %v1202_v42 = vpop.f32.mrf.mxu1 }
 0x43b   :  { %v1207_v36 = vadd.f32 %v1131_v34, %v3943_v35  ;;  %v1209_v51 = vadd.f32 %v1202_v42, %v3946_v50  ;;  %v3421_v34 = vld [vmem:[#allocation11 + $0xe8] sm:$0xff]  ;;  %v3424_v35 = vld [vmem:[#allocation11 + $0xf8] sm:$0xff]  ;;  %v3442_v42 = vld [vmem:[#allocation11 + $0xd0] sm:$0xff] }
 0x43c   :  { %v1133_v37 = vpop.f32.mrf.mxu0  ;;  %v1204_v44 = vpop.f32.mrf.mxu1  ;;  %v3463_v50 = vld [vmem:[#allocation11 + $0x80] sm:$0xff] }
 0x43d   :  { %v2176_v39 = vmul.f32 -1.442695, %v1207_v36  ;;  %v1208_v41 = vadd.f32 %v1133_v37, %v3944_v40  ;;  %v1210_v46 = vadd.f32 %v1204_v44, %v3945_v45  ;;  %v3427_v36 = vld [vmem:[#allocation11 + $0xe0] sm:$0xff]  ;;  %v3430_v37 = vld [vmem:[#allocation11 + $0xf0] sm:$0xff]  ;;  %v3436_v40 = vld [vmem:[#allocation11 + $0xd8] sm:$0xff]  ;;  %3950 = vst [vmem:[#allocation42_spill] sm:$0xff] %v3463_v50 }
 0x43e   :  { %v3448_v44 = vld [vmem:[#allocation11 + $0xb8] sm:$0xff]  ;;  %v3451_v45 = vld [vmem:[#allocation11 + $0xa0] sm:$0xff] }
 0x43f   :  { %2357 = vpow2.f32 %v2176_v39  ;;  %v2177_v43 = vmul.f32 -1.442695, %v1208_v41  ;;  %v2178_v48 = vmul.f32 -1.442695, %v1210_v46  ;;  %v3433_v39 = vld [vmem:[#allocation11 + $0xc8] sm:$0xff]  ;;  %v3439_v41 = vld [vmem:[#allocation11 + $0xc0] sm:$0xff] }
 0x440   :  { %v3454_v46 = vld [vmem:[#allocation11 + $0xb0] sm:$0xff] }
 0x441   :  { %2359 = vpow2.f32 %v2177_v43  ;;  %v3445_v43 = vld [vmem:[#allocation11 + $0xa8] sm:$0xff] }
 0x442   :  { %2361 = vpow2.f32 %v2178_v48  ;;  %v3457_v48 = vld [vmem:[#allocation11 + $0x88] sm:$0xff] }
 0x44c   :  { %v2358_v49 = vpop.eup %2357 }
 0x44d   :  { %v1214_v20 = vadd.f32 1.0, %v2358_v49  ;;  %v3460_v49 = vld [vmem:[#allocation11 + $0x98] sm:$0xff] }
 0x44e   :  { %v2360_v62 = vpop.eup %2359 }
 0x44f   :  { %2363 = vrcp.f32 %v1214_v20  ;;  %v1220_v29 = vadd.f32 1.0, %v2360_v62  ;;  %v2362_v5 = vpop.eup %2361  ;;  %v3469_v20 = vld [vmem:[#allocation11 + $0x68] sm:$0xff]  ;;  %v3472_v62 = vld [vmem:[#allocation11 + $0x78] sm:$0xff] }
 0x450   :  { %2365 = vtanh.f32 %v1209_v51  ;;  %v1227_v9 = vadd.f32 1.0, %v2362_v5  ;;  %v3466_v51 = vld [vmem:[#allocation11 + $0x90] sm:$0xff]  ;;  %3952 = vst [vmem:[#allocation45_spill] sm:$0xff] %v3469_v20  ;;  %3953 = vst [vmem:[#allocation43_spill] sm:$0xff] %v3472_v62 }
 0x451   :  { %2367 = vrcp.f32 %v1220_v29  ;;  %3951 = vst [vmem:[#allocation44_spill] sm:$0xff] %v3466_v51  ;;  %v3475_v29 = vld [vmem:[#allocation11 + $0x60] sm:$0xff]  ;;  %v3478_v5 = vld [vmem:[#allocation11 + $0x70] sm:$0xff] }
 0x452   :  { %2369 = vrcp.f32 %v1227_v9  ;;  %3954 = vst [vmem:[#allocation25_spill] sm:$0xff] %v3475_v29  ;;  %3955 = vst [vmem:[#allocation26_spill] sm:$0xff] %v3478_v5  ;;  %v3490_v9 = vld [vmem:[#allocation11 + $0x50] sm:$0xff] }
 0x453   :  { %3959 = vst [vmem:[#allocation30_spill] sm:$0xff] %v3490_v9 }
 0x45c   :  { %v2364_v6 = vpop.eup %2363 }
 0x45d   :  { %v2366_v7 = vpop.eup %2365  ;;  %v1230_v10 = vmul.f32 %v2364_v6, %v3247_v31  ;;  %v3415_v31 = vld [vmem:[#allocation11 + $0x100] sm:$0xff]  ;;  %v3481_v6 = vld [vmem:[#allocation11 + $0x48] sm:$0xff] }
 0x45e   :  { %v2368_v8 = vpop.eup %2367  ;;  %3956 = vst [vmem:[#allocation27_spill] sm:$0xff] %v3481_v6 }
 0x45f   :  { %v1231_v12 = vmul.f32 %v2368_v8, %v2366_v7  ;;  %v2370_v14 = vpop.eup %2369  ;;  %v3484_v7 = vld [vmem:[#allocation11 + $0x58] sm:$0xff]  ;;  %v3487_v8 = vld [vmem:[#allocation11 + $0x40] sm:$0xff] }
 0x460   :  { %3957 = vst [vmem:[#allocation28_spill] sm:$0xff] %v3484_v7  ;;  %3958 = vst [vmem:[#allocation29_spill] sm:$0xff] %v3487_v8 }
 0x461   :  { %v3377_v13 = vadd.f32 %v1231_v12, %v1230_v10  ;;  %v3493_v10 = vld [vmem:[#allocation11 + $0x28] sm:$0xff]  ;;  %v3496_v12 = vld [vmem:[#allocation11 + $0x38] sm:$0xff] }
 0x462   :  { %3960 = vst [vmem:[#allocation31_spill] sm:$0xff] %v3493_v10  ;;  %3961 = vst [vmem:[#allocation32_spill] sm:$0xff] %v3496_v12 }
 0x463   :  { %2371 = vtanh.f32 %v3377_v13 }
 0x470   :  { %v2372_v15 = vpop.eup %2371 }
 0x471   :  { %v1234_v16 = vmul.f32 %v2372_v15, %v2370_v14  ;;  %v3499_v14 = vld [vmem:[#allocation11 + $0x20] sm:$0xff]  ;;  %v3502_v15 = vld [vmem:[#allocation11 + $0x30] sm:$0xff] }
 0x472   :  { %3962 = vst [vmem:[#allocation33_spill] sm:$0xff] %v3499_v14  ;;  %3963 = vst [vmem:[#allocation34_spill] sm:$0xff] %v3502_v15 }
 0x473   :  { %v3381_v17 = vadd.f32 %v1234_v16, %v3252_v1  ;;  %1308 = vmatmul.mubr.f32.vlgmr.msra.gmra.mxu0 %v1234_v16  ;;  %1379 = vmatmul.mubr.f32.vlgmr.msra.gmra.mxu1 %v1234_v16  ;;  %v3418_v1 = vld [vmem:[#allocation11 + $0x110] sm:$0xff]  ;;  %v3505_v16 = vld [vmem:[#allocation11 + $0x8] sm:$0xff] }
 0x474   :  { %1422 = vmatpush1.msra.mxu0 %v3254_v54  ;;  %1493 = vmatpush1.msra.mxu1 %v3257_v63  ;;  %3964 = vst [vmem:[#allocation35_spill] sm:$0xff] %v3505_v16 }
 0x475   :  { %1423 = vmatprep.subr.mxu0 %v3260_v59  ;;  %1494 = vmatprep.subr.mxu1 %v3263_v58 }
 0x476   :  { %1424 = vmatpush1.msra.mxu0 %v3266_v3  ;;  %1495 = vmatpush1.msra.mxu1 %v3269_v53 }
 0x477   :  { %1425 = vmatprep.subr.mxu0 %v3272_v56  ;;  %1496 = vmatprep.subr.mxu1 %v3275_v57 }
 0x478   :  { %1426 = vmatpush1.msra.mxu0 %v3278_v61  ;;  %1497 = vmatpush1.msra.mxu1 %v3281_v55 }
 0x479   :  { %1427 = vmatprep.subr.mxu0 %v3284_v52  ;;  %1498 = vmatprep.subr.mxu1 %v3287_v60 }
 0x47a   :  { %1428 = vmatpush1.msra.mxu0 %v3290_v4  ;;  %1499 = vmatpush1.msra.mxu1 %v3293_v38 }
 0x47b   :  { %1429 = vmatprep.subr.mxu0 %v3296_v0  ;;  %1500 = vmatprep.subr.mxu1 %v3299_v27 }
 0x47c   :  { %1430 = vmatpush1.msra.mxu0 %v3302_v28  ;;  %1501 = vmatpush1.msra.mxu1 %v3947_v18 }
 0x47d   :  { %1431 = vmatprep.subr.mxu0 %v3948_v19  ;;  %1502 = vmatprep.subr.mxu1 %v3949_v21 }
 0x47e   :  { %1432 = vmatpush1.msra.mxu0 %v3314_v2  ;;  %1503 = vmatpush1.msra.mxu1 %v3317_v47 }
 0x47f   :  { %1433 = vmatprep.subr.mxu0 %v3320_v11  ;;  %1504 = vmatprep.subr.mxu1 %v3323_v30 }
 0x480   :  { %1434 = vmatpush1.msra.mxu0 %v3326_v32  ;;  %1505 = vmatpush1.msra.mxu1 %v3329_v33 }
 0x481   :  { %1435 = vmatprep.subr.mxu0 %v3409_v22  ;;  %1506 = vmatprep.subr.mxu1 %v3412_v24 }
 0x482   :  { %1436 = vmatpush1.msra.mxu0 %v3415_v31  ;;  %1507 = vmatpush1.msra.mxu1 %v3418_v1 }
 0x483   :  { %1437 = vmatprep.subr.mxu0 %v3421_v34  ;;  %1508 = vmatprep.subr.mxu1 %v3424_v35 }
 0x484   :  { %1438 = vmatpush1.msra.mxu0 %v3427_v36  ;;  %1509 = vmatpush1.msra.mxu1 %v3430_v37 }
 0x485   :  { %1439 = vmatprep.subr.mxu0 %v3433_v39  ;;  %1510 = vmatprep.subr.mxu1 %v3436_v40 }
 0x486   :  { %1440 = vmatpush1.msra.mxu0 %v3439_v41  ;;  %1511 = vmatpush1.msra.mxu1 %v3442_v42 }
 0x487   :  { %1441 = vmatprep.subr.mxu0 %v3445_v43  ;;  %1512 = vmatprep.subr.mxu1 %v3448_v44 }
 0x488   :  { %1442 = vmatpush1.msra.mxu0 %v3451_v45  ;;  %1513 = vmatpush1.msra.mxu1 %v3454_v46 }
 0x489   :  { %1443 = vmatprep.subr.mxu0 %v3457_v48  ;;  %1514 = vmatprep.subr.mxu1 %v3460_v49 }
 0x48a   :  { %1444 = vmatpush1.msra.mxu0 %v3463_v50  ;;  %1515 = vmatpush1.msra.mxu1 %v3466_v51  ;;  %v3971_v51 = vld [vmem:[#allocation55_spill] sm:$0xff] }
 0x48b   :  { %1445 = vmatprep.subr.mxu0 %v3469_v20  ;;  %1516 = vmatprep.subr.mxu1 %v3472_v62  ;;  %v3970_v62 = vld [vmem:[#allocation57_spill] sm:$0xff] }
 0x48c   :  { %1446 = vmatpush1.msra.mxu0 %v3475_v29  ;;  %1517 = vmatpush1.msra.mxu1 %v3478_v5 }
 0x48d   :  { %1447 = vmatprep.subr.mxu0 %v3481_v6  ;;  %1518 = vmatprep.subr.mxu1 %v3484_v7  ;;  %v3969_v7 = vld [vmem:[#allocation56_spill] sm:$0xff] }
 0x48e   :  { %1448 = vmatpush1.msra.mxu0 %v3487_v8  ;;  %1519 = vmatpush1.msra.mxu1 %v3490_v9  ;;  %v3508_v9 = vld [vmem:[#allocation11 + $0x18] sm:$0xff] }
 0x48f   :  { %1449 = vmatprep.subr.mxu0 %v3493_v10  ;;  %1520 = vmatprep.subr.mxu1 %v3496_v12  ;;  %3965 = vst [vmem:[#allocation36_spill] sm:$0xff] %v3508_v9  ;;  %v3511_v10 = vld [vmem:[#allocation11] sm:$0xff]  ;;  %v3515_v12 = vld [vmem:[#allocation11 + $0x10] sm:$0xff] }
 0x490   :  { %1450 = vmatpush1.msra.mxu0 %v3499_v14  ;;  %1521 = vmatpush1.msra.mxu1 %v3502_v15  ;;  %3966 = vst [vmem:[#allocation37_spill] sm:$0xff] %v3511_v10  ;;  %3967 = vst [vmem:[#allocation38_spill] sm:$0xff] %v3515_v12  ;;  %v3968_v15 = vld [vmem:[#allocation54_spill] sm:$0xff] }
 0x491   :  { %1451 = vmatprep.subr.mxu0 %v3505_v16  ;;  %1522 = vmatprep.subr.mxu1 %v3508_v9 }
 0x492   :  { %1452 = vmatpush1.msra.mxu0 %v3511_v10  ;;  %1485 = vmatprep.mubr.f32.mxu0 %v3931_v23 }
 0x493   :  { %1523 = vmatpush1.msra.mxu1 %v3515_v12  ;;  %1556 = vmatprep.mubr.f32.mxu1 %v3931_v23 }
 0x494   :  { %1599 = vmatprep.subr.mxu0 %v3236_v25  ;;  %1670 = vmatprep.subr.mxu1 %v3239_v26 }
 0x533   :  { %v1309_v16 = vpop.f32.mrf.mxu0  ;;  %v1380_v10 = vpop.f32.mrf.mxu1 }
 0x534   :  { %v1385_v14 = vadd.f32 %v1309_v16, %v3968_v15  ;;  %v1387_v25 = vadd.f32 %v1380_v10, %v3971_v51  ;;  %v3977_v10 = vld [vmem:[#allocation26_spill] sm:$0xff] }
 0x535   :  { %v1311_v9 = vpop.f32.mrf.mxu0  ;;  %v1382_v29 = vpop.f32.mrf.mxu1 }
 0x536   :  { %v2179_v8 = vmul.f32 -1.442695, %v1385_v14  ;;  %v1386_v6 = vadd.f32 %v1311_v9, %v3969_v7  ;;  %v1388_v12 = vadd.f32 %v1382_v29, %v3970_v62  ;;  %v3976_v29 = vld [vmem:[#allocation25_spill] sm:$0xff] }
 0x538   :  { %2373 = vpow2.f32 %v2179_v8  ;;  %v2180_v5 = vmul.f32 -1.442695, %v1386_v6  ;;  %v2181_v20 = vmul.f32 -1.442695, %v1388_v12  ;;  %v3978_v12 = vld [vmem:[#allocation27_spill] sm:$0xff] }
 0x53a   :  { %2375 = vpow2.f32 %v2180_v5 }
 0x53b   :  { %2377 = vpow2.f32 %v2181_v20 }
 0x545   :  { %v2374_v23 = vpop.eup %2373 }
 0x546   :  { %v1392_v50 = vadd.f32 1.0, %v2374_v23 }
 0x547   :  { %v2376_v26 = vpop.eup %2375 }
 0x548   :  { %2379 = vrcp.f32 %v1392_v50  ;;  %v1398_v15 = vadd.f32 1.0, %v2376_v26  ;;  %v2378_v14 = vpop.eup %2377  ;;  %v3975_v50 = vld [vmem:[#allocation43_spill] sm:$0xff] }
 0x549   :  { %2381 = vtanh.f32 %v1387_v25  ;;  %v1405_v6 = vadd.f32 1.0, %v2378_v14  ;;  %v3972_v25 = vld [vmem:[#allocation42_spill] sm:$0xff]  ;;  %v3980_v14 = vld [vmem:[#allocation29_spill] sm:$0xff] }
 0x54a   :  { %2383 = vrcp.f32 %v1398_v15  ;;  %v3979_v15 = vld [vmem:[#allocation28_spill] sm:$0xff] }
 0x54b   :  { %2385 = vrcp.f32 %v1405_v6  ;;  %v3984_v6 = vld [vmem:[#allocation33_spill] sm:$0xff] }
 0x555   :  { %v2380_v7 = vpop.eup %2379 }
 0x556   :  { %v2382_v8 = vpop.eup %2381  ;;  %v1408_v5 = vmul.f32 %v2380_v7, %v3377_v13  ;;  %v3973_v13 = vld [vmem:[#allocation44_spill] sm:$0xff]  ;;  %v3981_v7 = vld [vmem:[#allocation30_spill] sm:$0xff] }
 0x557   :  { %v2384_v9 = vpop.eup %2383 }
 0x558   :  { %v1409_v16 = vmul.f32 %v2384_v9, %v2382_v8  ;;  %v2386_v23 = vpop.eup %2385  ;;  %v3982_v8 = vld [vmem:[#allocation31_spill] sm:$0xff]  ;;  %v3983_v9 = vld [vmem:[#allocation32_spill] sm:$0xff] }
 0x55a   :  { %v3526_v62 = vadd.f32 %v1409_v16, %v1408_v5  ;;  %v3985_v5 = vld [vmem:[#allocation34_spill] sm:$0xff]  ;;  %v3986_v16 = vld [vmem:[#allocation35_spill] sm:$0xff] }
 0x55c   :  { %2387 = vtanh.f32 %v3526_v62 }
 0x569   :  { %v2388_v51 = vpop.eup %2387 }
 0x56a   :  { %v1412_v20 = vmul.f32 %v2388_v51, %v2386_v23  ;;  %v3987_v23 = vld [vmem:[#allocation36_spill] sm:$0xff]  ;;  %v3988_v51 = vld [vmem:[#allocation37_spill] sm:$0xff] }
 0x56c   :  { %v3530_v26 = vadd.f32 %v1412_v20, %v3381_v17  ;;  %1486 = vmatmul.mubr.f32.vlgmr.msra.gmra.mxu0 %v1412_v20  ;;  %1557 = vmatmul.mubr.f32.vlgmr.msra.gmra.mxu1 %v1412_v20  ;;  %v3974_v17 = vld [vmem:[#allocation45_spill] sm:$0xff]  ;;  %v3989_v20 = vmov 0.0  }
 0x56d   :  { %1600 = vmatpush1.msra.mxu0 %v3254_v54  ;;  %1671 = vmatpush1.msra.mxu1 %v3257_v63 }
 0x56e   :  { %1601 = vmatprep.subr.mxu0 %v3260_v59  ;;  %1672 = vmatprep.subr.mxu1 %v3263_v58 }
 0x56f   :  { %1602 = vmatpush1.msra.mxu0 %v3266_v3  ;;  %1673 = vmatpush1.msra.mxu1 %v3269_v53 }
 0x570   :  { %1603 = vmatprep.subr.mxu0 %v3272_v56  ;;  %1674 = vmatprep.subr.mxu1 %v3275_v57 }
 0x571   :  { %1604 = vmatpush1.msra.mxu0 %v3278_v61  ;;  %1675 = vmatpush1.msra.mxu1 %v3281_v55 }
 0x572   :  { %1605 = vmatprep.subr.mxu0 %v3284_v52  ;;  %1676 = vmatprep.subr.mxu1 %v3287_v60 }
 0x573   :  { %1606 = vmatpush1.msra.mxu0 %v3290_v4  ;;  %1677 = vmatpush1.msra.mxu1 %v3293_v38 }
 0x574   :  { %1607 = vmatprep.subr.mxu0 %v3296_v0  ;;  %1678 = vmatprep.subr.mxu1 %v3299_v27 }
 0x575   :  { %1608 = vmatpush1.msra.mxu0 %v3302_v28  ;;  %1679 = vmatpush1.msra.mxu1 %v3947_v18 }
 0x576   :  { %1609 = vmatprep.subr.mxu0 %v3948_v19  ;;  %1680 = vmatprep.subr.mxu1 %v3949_v21 }
 0x577   :  { %1610 = vmatpush1.msra.mxu0 %v3314_v2  ;;  %1681 = vmatpush1.msra.mxu1 %v3317_v47 }
 0x578   :  { %1611 = vmatprep.subr.mxu0 %v3320_v11  ;;  %1682 = vmatprep.subr.mxu1 %v3323_v30 }
 0x579   :  { %1612 = vmatpush1.msra.mxu0 %v3326_v32  ;;  %1683 = vmatpush1.msra.mxu1 %v3329_v33 }
 0x57a   :  { %1613 = vmatprep.subr.mxu0 %v3409_v22  ;;  %1684 = vmatprep.subr.mxu1 %v3412_v24 }
 0x57b   :  { %1614 = vmatpush1.msra.mxu0 %v3415_v31  ;;  %1685 = vmatpush1.msra.mxu1 %v3418_v1 }
 0x57c   :  { %1615 = vmatprep.subr.mxu0 %v3421_v34  ;;  %1686 = vmatprep.subr.mxu1 %v3424_v35 }
 0x57d   :  { %1616 = vmatpush1.msra.mxu0 %v3427_v36  ;;  %1687 = vmatpush1.msra.mxu1 %v3430_v37 }
 0x57e   :  { %1617 = vmatprep.subr.mxu0 %v3433_v39  ;;  %1688 = vmatprep.subr.mxu1 %v3436_v40 }
 0x57f   :  { %1618 = vmatpush1.msra.mxu0 %v3439_v41  ;;  %1689 = vmatpush1.msra.mxu1 %v3442_v42 }
 0x580   :  { %1619 = vmatprep.subr.mxu0 %v3445_v43  ;;  %1690 = vmatprep.subr.mxu1 %v3448_v44 }
 0x581   :  { %1620 = vmatpush1.msra.mxu0 %v3451_v45  ;;  %1691 = vmatpush1.msra.mxu1 %v3454_v46 }
 0x582   :  { %1621 = vmatprep.subr.mxu0 %v3457_v48  ;;  %1692 = vmatprep.subr.mxu1 %v3460_v49 }
 0x583   :  { %1622 = vmatpush1.msra.mxu0 %v3972_v25  ;;  %1693 = vmatpush1.msra.mxu1 %v3973_v13  ;;  %v3996_v13 = vld [vmem:[#allocation59_spill] sm:$0xff] }
 0x584   :  { %1623 = vmatprep.subr.mxu0 %v3974_v17  ;;  %1694 = vmatprep.subr.mxu1 %v3975_v50  ;;  %v3995_v50 = vld [vmem:[#allocation61_spill] sm:$0xff] }
 0x585   :  { %1624 = vmatpush1.msra.mxu0 %v3976_v29  ;;  %1695 = vmatpush1.msra.mxu1 %v3977_v10 }
 0x586   :  { %1625 = vmatprep.subr.mxu0 %v3978_v12  ;;  %1696 = vmatprep.subr.mxu1 %v3979_v15  ;;  %v3990_v15 = vld [vmem:[#allocation38_spill] sm:$0xff] }
 0x587   :  { %1626 = vmatpush1.msra.mxu0 %v3980_v14  ;;  %1697 = vmatpush1.msra.mxu1 %v3981_v7  ;;  %v3991_v7 = vld [vmem:[#allocation22_spill] sm:$0xff] }
 0x588   :  { %1627 = vmatprep.subr.mxu0 %v3982_v8  ;;  %1698 = vmatprep.subr.mxu1 %v3983_v9  ;;  %v3992_v8 = vld [vmem:[#allocation23_spill] sm:$0xff] }
 0x589   :  { %1628 = vmatpush1.msra.mxu0 %v3984_v6  ;;  %1699 = vmatpush1.msra.mxu1 %v3985_v5  ;;  %v3993_v6 = vld [vmem:[#allocation58_spill] sm:$0xff] }
 0x58a   :  { %1629 = vmatprep.subr.mxu0 %v3986_v16  ;;  %1700 = vmatprep.subr.mxu1 %v3987_v23  ;;  %v3994_v16 = vld [vmem:[#allocation60_spill] sm:$0xff] }
 0x58b   :  { %1630 = vmatpush1.msra.mxu0 %v3988_v51  ;;  %1663 = vmatprep.mubr.f32.mxu0 %v3989_v20 }
 0x58c   :  { %1701 = vmatpush1.msra.mxu1 %v3990_v15  ;;  %1734 = vmatprep.mubr.f32.mxu1 %v3989_v20 }
 0x58d   :  { %1777 = vmatprep.subr.mxu0 %v3991_v7  ;;  %1848 = vmatprep.subr.mxu1 %v3992_v8 }
 0x62c   :  { %v1487_v9 = vpop.f32.mrf.mxu0  ;;  %v1558_v23 = vpop.f32.mrf.mxu1 }
 0x62d   :  { %v1563_v14 = vadd.f32 %v1487_v9, %v3993_v6  ;;  %v1565_v7 = vadd.f32 %v1558_v23, %v3996_v13 }
 0x62e   :  { %v1489_v5 = vpop.f32.mrf.mxu0  ;;  %v1560_v29 = vpop.f32.mrf.mxu1 }
 0x62f   :  { %v2182_v12 = vmul.f32 -1.442695, %v1563_v14  ;;  %v1564_v10 = vadd.f32 %v1489_v5, %v3994_v16  ;;  %v1566_v15 = vadd.f32 %v1560_v29, %v3995_v50 }
 0x631   :  { %2389 = vpow2.f32 %v2182_v12  ;;  %v2183_v51 = vmul.f32 -1.442695, %v1564_v10  ;;  %v2184_v17 = vmul.f32 -1.442695, %v1566_v15 }
 0x633   :  { %2391 = vpow2.f32 %v2183_v51 }
 0x634   :  { %2393 = vpow2.f32 %v2184_v17 }
 0x63e   :  { %v2390_v20 = vpop.eup %2389 }
 0x63f   :  { %v1570_v25 = vadd.f32 1.0, %v2390_v20 }
 0x640   :  { %v2392_v8 = vpop.eup %2391 }
 0x641   :  { %2395 = vrcp.f32 %v1570_v25  ;;  %v1576_v9 = vadd.f32 1.0, %v2392_v8  ;;  %v2394_v14 = vpop.eup %2393  ;;  %v1970_v8 = vld [vmem:[#allocation12 + $0x78] sm:$0xff] }
 0x642   :  { %2397 = vtanh.f32 %v1565_v7  ;;  %v1583_v10 = vadd.f32 1.0, %v2394_v14  ;;  %v1968_v14 = vld [vmem:[#allocation12 + $0x68] sm:$0xff] }
 0x643   :  { %2399 = vrcp.f32 %v1576_v9  ;;  %v1969_v9 = vld [vmem:[#allocation12 + $0x70] sm:$0xff] }
 0x644   :  { %2401 = vrcp.f32 %v1583_v10  ;;  %v1964_v10 = vld [vmem:[#allocation12 + $0x48] sm:$0xff] }
 0x64e   :  { %v2396_v6 = vpop.eup %2395 }
 0x64f   :  { %v2398_v12 = vpop.eup %2397  ;;  %v1586_v16 = vmul.f32 %v2396_v6, %v3526_v62  ;;  %v1967_v6 = vld [vmem:[#allocation12 + $0x60] sm:$0xff] }
 0x650   :  { %v2400_v5 = vpop.eup %2399 }
 0x651   :  { %v1587_v51 = vmul.f32 %v2400_v5, %v2398_v12  ;;  %v2402_v13 = vpop.eup %2401  ;;  %v1966_v12 = vld [vmem:[#allocation12 + $0x58] sm:$0xff]  ;;  %v1965_v5 = vld [vmem:[#allocation12 + $0x50] sm:$0xff] }
 0x653   :  { %v3603_v50 = vadd.f32 %v1587_v51, %v1586_v16  ;;  %v1963_v16 = vld [vmem:[#allocation12 + $0x40] sm:$0xff]  ;;  %v1962_v51 = vld [vmem:[#allocation12 + $0x38] sm:$0xff] }
 0x655   :  { %2403 = vtanh.f32 %v3603_v50 }
 0x662   :  { %v2404_v29 = vpop.eup %2403 }
 0x663   :  { %v1590_v17 = vmul.f32 %v2404_v29, %v2402_v13  ;;  %v1960_v13 = vld [vmem:[#allocation12 + $0x28] sm:$0xff]  ;;  %v1959_v29 = vld [vmem:[#allocation12 + $0x20] sm:$0xff] }
 0x665   :  { %1664 = vmatmul.mubr.f32.vlgmr.msra.gmra.mxu0 %v1590_v17  ;;  %1735 = vmatmul.mubr.f32.vlgmr.msra.gmra.mxu1 %v1590_v17  ;;  %v3607_v25 = vadd.f32 %v1590_v17, %v3530_v26  ;;  %v1958_v17 = vld [vmem:[#allocation12 + $0x18] sm:$0xff] }
 0x666   :  { %1778 = vmatpush1.msra.mxu0 %v3254_v54  ;;  %1849 = vmatpush1.msra.mxu1 %v3257_v63  ;;  %v3997_v54 = vld [vmem:[#allocation42_spill] sm:$0xff]  ;;  %v3998_v63 = vld [vmem:[#allocation44_spill] sm:$0xff] }
 0x667   :  { %1779 = vmatprep.subr.mxu0 %v3260_v59  ;;  %1850 = vmatprep.subr.mxu1 %v3263_v58  ;;  %v3999_v59 = vld [vmem:[#allocation45_spill] sm:$0xff]  ;;  %v4000_v58 = vld [vmem:[#allocation43_spill] sm:$0xff] }
 0x668   :  { %1780 = vmatpush1.msra.mxu0 %v3266_v3  ;;  %1851 = vmatpush1.msra.mxu1 %v3269_v53  ;;  %v4001_v3 = vld [vmem:[#allocation25_spill] sm:$0xff]  ;;  %v4002_v53 = vld [vmem:[#allocation26_spill] sm:$0xff] }
 0x669   :  { %1781 = vmatprep.subr.mxu0 %v3272_v56  ;;  %1852 = vmatprep.subr.mxu1 %v3275_v57  ;;  %v4003_v56 = vld [vmem:[#allocation27_spill] sm:$0xff]  ;;  %v4004_v57 = vld [vmem:[#allocation28_spill] sm:$0xff] }
 0x66a   :  { %1782 = vmatpush1.msra.mxu0 %v3278_v61  ;;  %1853 = vmatpush1.msra.mxu1 %v3281_v55  ;;  %v4005_v61 = vld [vmem:[#allocation29_spill] sm:$0xff]  ;;  %v4006_v55 = vld [vmem:[#allocation30_spill] sm:$0xff] }
 0x66b   :  { %1783 = vmatprep.subr.mxu0 %v3284_v52  ;;  %1854 = vmatprep.subr.mxu1 %v3287_v60  ;;  %v4007_v52 = vld [vmem:[#allocation31_spill] sm:$0xff]  ;;  %v4008_v60 = vld [vmem:[#allocation32_spill] sm:$0xff] }
 0x66c   :  { %1784 = vmatpush1.msra.mxu0 %v3290_v4  ;;  %1855 = vmatpush1.msra.mxu1 %v3293_v38  ;;  %v4009_v4 = vld [vmem:[#allocation33_spill] sm:$0xff]  ;;  %v4010_v38 = vld [vmem:[#allocation34_spill] sm:$0xff] }
 0x66d   :  { %1785 = vmatprep.subr.mxu0 %v3296_v0  ;;  %1856 = vmatprep.subr.mxu1 %v3299_v27  ;;  %v4011_v0 = vld [vmem:[#allocation35_spill] sm:$0xff]  ;;  %v4012_v27 = vld [vmem:[#allocation36_spill] sm:$0xff] }
 0x66e   :  { %1786 = vmatpush1.msra.mxu0 %v3302_v28  ;;  %1857 = vmatpush1.msra.mxu1 %v3947_v18  ;;  %v4013_v28 = vld [vmem:[#allocation37_spill] sm:$0xff] }
 0x66f   :  { %1787 = vmatprep.subr.mxu0 %v3948_v19  ;;  %1858 = vmatprep.subr.mxu1 %v3949_v21  ;;  %v4017_v19 = vld [vmem:[#allocation64_spill] sm:$0xff] }
 0x670   :  { %1788 = vmatpush1.msra.mxu0 %v3314_v2  ;;  %1859 = vmatpush1.msra.mxu1 %v3317_v47  ;;  %v4016_v2 = vld [vmem:[#allocation62_spill] sm:$0xff] }
 0x671   :  { %1789 = vmatprep.subr.mxu0 %v3320_v11  ;;  %1860 = vmatprep.subr.mxu1 %v3323_v30  ;;  %v4014_v30 = vmov 0.0  }
 0x672   :  { %1790 = vmatpush1.msra.mxu0 %v3326_v32  ;;  %1861 = vmatpush1.msra.mxu1 %v3329_v33  ;;  %v4015_v32 = vld [vmem:[#allocation38_spill] sm:$0xff] }
 0x673   :  { %1791 = vmatprep.subr.mxu0 %v3409_v22  ;;  %1862 = vmatprep.subr.mxu1 %v3412_v24 }
 0x674   :  { %1792 = vmatpush1.msra.mxu0 %v3415_v31  ;;  %1863 = vmatpush1.msra.mxu1 %v3418_v1  ;;  %v4018_v1 = vld [vmem:[#allocation65_spill] sm:$0xff] }
 0x675   :  { %1793 = vmatprep.subr.mxu0 %v3421_v34  ;;  %1864 = vmatprep.subr.mxu1 %v3424_v35 }
 0x676   :  { %1794 = vmatpush1.msra.mxu0 %v3427_v36  ;;  %1865 = vmatpush1.msra.mxu1 %v3430_v37  ;;  %v4019_v37 = vld [vmem:[#allocation63_spill] sm:$0xff] }
 0x677   :  { %1795 = vmatprep.subr.mxu0 %v3433_v39  ;;  %1866 = vmatprep.subr.mxu1 %v3436_v40 }
 0x678   :  { %1796 = vmatpush1.msra.mxu0 %v3439_v41  ;;  %1867 = vmatpush1.msra.mxu1 %v3442_v42 }
 0x679   :  { %1797 = vmatprep.subr.mxu0 %v3445_v43  ;;  %1868 = vmatprep.subr.mxu1 %v3448_v44 }
 0x67a   :  { %1798 = vmatpush1.msra.mxu0 %v3451_v45  ;;  %1869 = vmatpush1.msra.mxu1 %v3454_v46 }
 0x67b   :  { %1799 = vmatprep.subr.mxu0 %v3457_v48  ;;  %1870 = vmatprep.subr.mxu1 %v3460_v49 }
 0x67c   :  { %1800 = vmatpush1.msra.mxu0 %v3997_v54  ;;  %1871 = vmatpush1.msra.mxu1 %v3998_v63  ;;  %v1956_v54 = vld [vmem:[#allocation12 + $0x8] sm:$0xff]  ;;  %v1955_v63 = vld [vmem:[#allocation12] sm:$0xff] }
 0x67d   :  { %1801 = vmatprep.subr.mxu0 %v3999_v59  ;;  %1872 = vmatprep.subr.mxu1 %v4000_v58  ;;  %v2064_v59 = vld [vmem:[#allocation14 + $0x78] sm:$0xff]  ;;  %v2063_v58 = vld [vmem:[#allocation14 + $0x70] sm:$0xff] }
 0x67e   :  { %1802 = vmatpush1.msra.mxu0 %v4001_v3  ;;  %1873 = vmatpush1.msra.mxu1 %v4002_v53  ;;  %v2062_v3 = vld [vmem:[#allocation14 + $0x68] sm:$0xff]  ;;  %v2061_v53 = vld [vmem:[#allocation14 + $0x60] sm:$0xff] }
 0x67f   :  { %1803 = vmatprep.subr.mxu0 %v4003_v56  ;;  %1874 = vmatprep.subr.mxu1 %v4004_v57  ;;  %v2060_v56 = vld [vmem:[#allocation14 + $0x58] sm:$0xff]  ;;  %v2059_v57 = vld [vmem:[#allocation14 + $0x50] sm:$0xff] }
 0x680   :  { %1804 = vmatpush1.msra.mxu0 %v4005_v61  ;;  %1875 = vmatpush1.msra.mxu1 %v4006_v55  ;;  %v2058_v61 = vld [vmem:[#allocation14 + $0x48] sm:$0xff]  ;;  %v2057_v55 = vld [vmem:[#allocation14 + $0x40] sm:$0xff] }
 0x681   :  { %1805 = vmatprep.subr.mxu0 %v4007_v52  ;;  %1876 = vmatprep.subr.mxu1 %v4008_v60  ;;  %v2056_v52 = vld [vmem:[#allocation14 + $0x38] sm:$0xff]  ;;  %v2055_v60 = vld [vmem:[#allocation14 + $0x30] sm:$0xff] }
 0x682   :  { %1806 = vmatpush1.msra.mxu0 %v4009_v4  ;;  %1877 = vmatpush1.msra.mxu1 %v4010_v38  ;;  %v2054_v4 = vld [vmem:[#allocation14 + $0x28] sm:$0xff]  ;;  %v2053_v38 = vld [vmem:[#allocation14 + $0x20] sm:$0xff] }
 0x683   :  { %1807 = vmatprep.subr.mxu0 %v4011_v0  ;;  %1878 = vmatprep.subr.mxu1 %v4012_v27  ;;  %v2052_v0 = vld [vmem:[#allocation14 + $0x18] sm:$0xff] }
 0x684   :  { %1808 = vmatpush1.msra.mxu0 %v4013_v28  ;;  %1841 = vmatprep.mubr.f32.mxu0 %v4014_v30  ;;  %v4020_v28 = vld [vmem:[#allocation66_spill] sm:$0xff] }
 0x685   :  { %1879 = vmatpush1.msra.mxu1 %v4015_v32  ;;  %1912 = vmatprep.mubr.f32.mxu1 %v4014_v30 }
 0x686   :  { %2227 = vmatprep.subr.mxu0 %v4014_v30  ;;  %2262 = vmatprep.subr.mxu1 %v4014_v30 }
 0x725   :  { %v1665_v33 = vpop.f32.mrf.mxu0  ;;  %v1736_v22 = vpop.f32.mrf.mxu1 }
 0x726   :  { %v1741_v47 = vadd.f32 %v1665_v33, %v4016_v2  ;;  %v1743_v39 = vadd.f32 %v1736_v22, %v4019_v37  ;;  %v4022_v22 = vld [vmem:[#allocation69_spill] sm:$0xff] }
 0x727   :  { %v1667_v11 = vpop.f32.mrf.mxu0  ;;  %v1738_v31 = vpop.f32.mrf.mxu1 }
 0x728   :  { %v2185_v18 = vmul.f32 -1.442695, %v1741_v47  ;;  %v1742_v21 = vadd.f32 %v1667_v11, %v4017_v19  ;;  %v1744_v34 = vadd.f32 %v1738_v31, %v4018_v1  ;;  %v4021_v47 = vld [vmem:[#allocation68_spill] sm:$0xff] }
 0x72a   :  { %2405 = vpow2.f32 %v2185_v18  ;;  %v2186_v24 = vmul.f32 -1.442695, %v1742_v21  ;;  %v2187_v35 = vmul.f32 -1.442695, %v1744_v34  ;;  %v4023_v34 = vld [vmem:[#allocation67_spill] sm:$0xff] }
 0x72c   :  { %2407 = vpow2.f32 %v2186_v24 }
 0x72d   :  { %2409 = vpow2.f32 %v2187_v35 }
 0x737   :  { %v2406_v36 = vpop.eup %2405 }
 0x738   :  { %v1748_v40 = vadd.f32 1.0, %v2406_v36 }
 0x739   :  { %v2408_v41 = vpop.eup %2407 }
 0x73a   :  { %2411 = vrcp.f32 %v1748_v40  ;;  %v1754_v42 = vadd.f32 1.0, %v2408_v41  ;;  %v2410_v43 = vpop.eup %2409 }
 0x73b   :  { %2413 = vtanh.f32 %v1743_v39  ;;  %v1761_v48 = vadd.f32 1.0, %v2410_v43 }
 0x73c   :  { %2415 = vrcp.f32 %v1754_v42 }
 0x73d   :  { %2417 = vrcp.f32 %v1761_v48 }
 0x747   :  { %v2412_v44 = vpop.eup %2411 }
 0x748   :  { %v2414_v45 = vpop.eup %2413  ;;  %v1764_v49 = vmul.f32 %v2412_v44, %v3603_v50  ;;  %v1961_v50 = vld [vmem:[#allocation12 + $0x30] sm:$0xff] }
 0x749   :  { %v2416_v46 = vpop.eup %2415 }
 0x74a   :  { %v1765_v62 = vmul.f32 %v2416_v46, %v2414_v45  ;;  %v2418_v15 = vpop.eup %2417 }
 0x74c   :  { %v3680_v26 = vadd.f32 %v1765_v62, %v1764_v49 }
 0x74e   :  { %2419 = vtanh.f32 %v3680_v26 }
 0x75b   :  { %v2420_v23 = vpop.eup %2419 }
 0x75c   :  { %v1768_v20 = vmul.f32 %v2420_v23, %v2418_v15 }
 0x75e   :  { %1842 = vmatmul.mubr.f32.vlgmr.msra.gmra.mxu0 %v1768_v20  ;;  %1913 = vmatmul.mubr.f32.vlgmr.msra.gmra.mxu1 %v1768_v20  ;;  %v3684_v7 = vadd.f32 %v1768_v20, %v3607_v25  ;;  %v1957_v25 = vld [vmem:[#allocation12 + $0x10] sm:$0xff] }
 0x75f   :  { %2228 = vmatpush3.msra.mxu0 %v1970_v8  ;;  %2259 = vmatprep.mubr.msk.f32.mxu0 %vm2639_vm0, %v4014_v30  ;;  %v2051_v8 = vld [vmem:[#allocation14 + $0x10] sm:$0xff] }
 0x760   :  { %2229 = vmatprep.subr.mxu0 %v4014_v30  ;;  %2294 = vmatprep.mubr.msk.f32.mxu1 %vm2639_vm0, %v4014_v30 }
 0x761   :  { %2230 = vmatpush3.msra.mxu0 %v1969_v9  ;;  %2263 = vmatpush3.msra.mxu1 %v2064_v59  ;;  %v2050_v9 = vld [vmem:[#allocation14 + $0x8] sm:$0xff] }
 0x762   :  { %2231 = vmatprep.subr.mxu0 %v4014_v30  ;;  %2264 = vmatprep.subr.mxu1 %v4014_v30 }
 0x763   :  { %2232 = vmatpush3.msra.mxu0 %v1968_v14  ;;  %2265 = vmatpush3.msra.mxu1 %v2063_v58  ;;  %v2049_v14 = vld [vmem:[#allocation14] sm:$0xff] }
 0x764   :  { %2233 = vmatprep.subr.mxu0 %v4014_v30  ;;  %2266 = vmatprep.subr.mxu1 %v4014_v30 }
 0x765   :  { %2234 = vmatpush3.msra.mxu0 %v1967_v6  ;;  %2267 = vmatpush3.msra.mxu1 %v2062_v3 }
 0x766   :  { %2235 = vmatprep.subr.mxu0 %v4014_v30  ;;  %2268 = vmatprep.subr.mxu1 %v4014_v30 }
 0x767   :  { %2236 = vmatpush3.msra.mxu0 %v1966_v12  ;;  %2269 = vmatpush3.msra.mxu1 %v2061_v53 }
 0x768   :  { %2237 = vmatprep.subr.mxu0 %v4014_v30  ;;  %2270 = vmatprep.subr.mxu1 %v4014_v30 }
 0x769   :  { %2238 = vmatpush3.msra.mxu0 %v1965_v5  ;;  %2271 = vmatpush3.msra.mxu1 %v2060_v56 }
 0x76a   :  { %2239 = vmatprep.subr.mxu0 %v4014_v30  ;;  %2272 = vmatprep.subr.mxu1 %v4014_v30 }
 0x76b   :  { %2240 = vmatpush3.msra.mxu0 %v1964_v10  ;;  %2273 = vmatpush3.msra.mxu1 %v2059_v57  ;;  %v2192_v10 = vld [vmem:[%s3740_s7] ss:$0 sm:$0xff] }
 0x76c   :  { %2241 = vmatprep.subr.mxu0 %v4014_v30  ;;  %2274 = vmatprep.subr.mxu1 %v4014_v30 }
 0x76d   :  { %2242 = vmatpush3.msra.mxu0 %v1963_v16  ;;  %2275 = vmatpush3.msra.mxu1 %v2058_v61 }
 0x76e   :  { %2243 = vmatprep.subr.mxu0 %v4014_v30  ;;  %2276 = vmatprep.subr.mxu1 %v4014_v30 }
 0x76f   :  { %2244 = vmatpush3.msra.mxu0 %v1962_v51  ;;  %2277 = vmatpush3.msra.mxu1 %v2057_v55 }
 0x770   :  { %2245 = vmatprep.subr.mxu0 %v4014_v30  ;;  %2278 = vmatprep.subr.mxu1 %v4014_v30 }
 0x771   :  { %2246 = vmatpush3.msra.mxu0 %v1961_v50  ;;  %2279 = vmatpush3.msra.mxu1 %v2056_v52 }
 0x772   :  { %2247 = vmatprep.subr.mxu0 %v4014_v30  ;;  %2280 = vmatprep.subr.mxu1 %v4014_v30 }
 0x773   :  { %2248 = vmatpush3.msra.mxu0 %v1960_v13  ;;  %2281 = vmatpush3.msra.mxu1 %v2055_v60 }
 0x774   :  { %2249 = vmatprep.subr.mxu0 %v4014_v30  ;;  %2282 = vmatprep.subr.mxu1 %v4014_v30 }
 0x775   :  { %2250 = vmatpush3.msra.mxu0 %v1959_v29  ;;  %2283 = vmatpush3.msra.mxu1 %v2054_v4 }
 0x776   :  { %2251 = vmatprep.subr.mxu0 %v4014_v30  ;;  %2284 = vmatprep.subr.mxu1 %v4014_v30 }
 0x777   :  { %2252 = vmatpush3.msra.mxu0 %v1958_v17  ;;  %2285 = vmatpush3.msra.mxu1 %v2053_v38 }
 0x778   :  { %2253 = vmatprep.subr.mxu0 %v4014_v30  ;;  %2286 = vmatprep.subr.mxu1 %v4014_v30 }
 0x779   :  { %2254 = vmatpush3.msra.mxu0 %v1957_v25  ;;  %2287 = vmatpush3.msra.mxu1 %v2052_v0 }
 0x77a   :  { %2255 = vmatprep.subr.mxu0 %v4014_v30  ;;  %2288 = vmatprep.subr.mxu1 %v4014_v30 }
 0x77b   :  { %2256 = vmatpush3.msra.mxu0 %v1956_v54  ;;  %2289 = vmatpush3.msra.mxu1 %v2051_v8 }
 0x77c   :  { %2257 = vmatprep.subr.mxu0 %v4014_v30  ;;  %2290 = vmatprep.subr.mxu1 %v4014_v30 }
 0x77d   :  { %2258 = vmatpush3.msra.mxu0 %v1955_v63  ;;  %2291 = vmatpush3.msra.mxu1 %v2050_v9 }
 0x77e   :  { %2292 = vmatprep.subr.mxu1 %v4014_v30 }
 0x77f   :  { %2293 = vmatpush3.msra.mxu1 %v2049_v14 }
 0x81e   :  { %v1843_v27 = vpop.f32.mrf.mxu0  ;;  %v1914_v18 = vpop.f32.mrf.mxu1 }
 0x81f   :  { %v1919_v32 = vadd.f32 %v1843_v27, %v4020_v28  ;;  %v1921_v35 = vadd.f32 %v1914_v18, %v4023_v34 }
 0x820   :  { %v1845_v33 = vpop.f32.mrf.mxu0  ;;  %v1916_v21 = vpop.f32.mrf.mxu1 }
 0x821   :  { %v2188_v2 = vmul.f32 -1.442695, %v1919_v32  ;;  %v1920_v11 = vadd.f32 %v1845_v33, %v4021_v47  ;;  %v1922_v24 = vadd.f32 %v1916_v21, %v4022_v22 }
 0x823   :  { %2421 = vpow2.f32 %v2188_v2  ;;  %v2189_v19 = vmul.f32 -1.442695, %v1920_v11  ;;  %v2190_v31 = vmul.f32 -1.442695, %v1922_v24 }
 0x825   :  { %2423 = vpow2.f32 %v2189_v19 }
 0x826   :  { %2425 = vpow2.f32 %v2190_v31 }
 0x830   :  { %v2422_v1 = vpop.eup %2421 }
 0x831   :  { %v1926_v36 = vadd.f32 1.0, %v2422_v1 }
 0x832   :  { %v2424_v37 = vpop.eup %2423 }
 0x833   :  { %2427 = vrcp.f32 %v1926_v36  ;;  %v1932_v39 = vadd.f32 1.0, %v2424_v37  ;;  %v2426_v40 = vpop.eup %2425 }
 0x834   :  { %2429 = vtanh.f32 %v1921_v35  ;;  %v1939_v44 = vadd.f32 1.0, %v2426_v40 }
 0x835   :  { %2431 = vrcp.f32 %v1932_v39 }
 0x836   :  { %2433 = vrcp.f32 %v1939_v44 }
 0x840   :  { %v2428_v41 = vpop.eup %2427 }
 0x841   :  { %v2430_v42 = vpop.eup %2429  ;;  %v1942_v45 = vmul.f32 %v2428_v41, %v3680_v26  ;;  %v2191_v26 = vld [vmem:[%s3738_s5] ss:$0 sm:$0xff] }
 0x842   :  { %v2432_v43 = vpop.eup %2431 }
 0x843   :  { %v1943_v46 = vmul.f32 %v2432_v43, %v2430_v42  ;;  %v2434_v49 = vpop.eup %2433 }
 0x845   :  { %v1944_v48 = vadd.f32 %v1943_v46, %v1942_v45 }
 0x847   :  { %2435 = vtanh.f32 %v1944_v48 }
 0x854   :  { %v2436_v62 = vpop.eup %2435 }
 0x855   :  { %v1946_v15 = vmul.f32 %v2436_v62, %v2434_v49 }
 0x857   :  { %v1947_v23 = vadd.f32 %v1946_v15, %v3684_v7 }
 0x859   :  { %v1954_v20 = vmul.f32 0.125, %v1947_v23 }
 0x85b   :  { %2260 = vmatmul.mubr.f32.vlgmr.msra.gmra.mxu0 %v1954_v20 }
 0x91b   :  { %v2044_v6 = vpop.f32.mrf.mxu0 }
 0x91c   :  { %v2045_v12 = vadd.f32 %v2191_v26, %v2044_v6 }
 0x91d   :  { %v2261_v5 = vpop.f32.mrf.mxu0 }
 0x91e   :  { %v2048_v7 = vmax.f32 %v2045_v12, 0.0 }
 0x920   :  { %2295 = vmatmul.mubr.f32.vlgmr.msra.gmra.mxu1 %v2048_v7 }
 0x9e0   :  { %v2138_v16 = vpop.f32.mrf.mxu1 }
 0x9e1   :  { %v2139_v51 = vadd.f32 %v2192_v10, %v2138_v16 }
 0x9e2   :  { %v2296_v30 = vpop.f32.mrf.mxu1 }
 0x9e3   :  { %2142 = vst [vmem:[#allocation15] sm:$0xff] %v2139_v51 }
 0x9e4   :  { %2612 = shalt.err (!%p2609_p1)
}
 0x9e5   :  { %2152 = dma.vmem_to_hbm [thread:$0]  %s2150_s13, 128, %s3741_s8, [#allocation8]  }
 0x9e6   :  { %2627 = dma.done.wait [#allocation8], 128  }
 0x9e7   :  { %2628 = vsyncadd [#allocation8], 4294967168 }
 0x9e8   :  { %2156 = vsyncpa [#allocation7], 1 }
 0x9e9   :  { %2157 = vsyncpa [#allocation10], 1 }
 0x9ea   :  { %2158 = vsyncpa [#allocation13], 1 }
 0x9eb   :  { %2159 = vsyncpa [#allocation8], 1 }

</bundles_post_ra>
